<compile_context>
chip_gen: v5e
topology: v5e:2x2
jax: 0.10.0
libtpu: 0.0.40
codegen_flags: <defaults>
</compile_context>

<pallas_src>
import functools

import jax
import jax.numpy as jnp
from jax.experimental import pallas as pl
from jax.experimental.pallas import tpu as pltpu


# ----------------------------- Pallas kernel ---------------------------------


def _conv_relu_bn(x, w, aff, *, k, im2col):
    """'same' Conv1d (odd k, stride 1) + ReLU + folded eval-mode BatchNorm1d.

    x:   (TB, L, Cin) activations, channels-last (channels on lanes).
    w:   im2col path: (k*Cin, Cout);  per-tap path: (k, Cin, Cout).
    aff: (3, Cout) rows = [conv bias, bn scale, bn shift].
    Returns (TB, L, Cout) float32.
    """
    TB, L, cin = x.shape
    cout = w.shape[-1]
    pad = k // 2
    halo = max(8, ((pad + 7) // 8) * 8)          # 8-sublane-aligned zero halo
    if pad > 0:
        z = jnp.zeros((TB, halo, cin), x.dtype)
        xp = jnp.concatenate([z, x, z], axis=1)  # x lands at an 8-aligned offset
        base = halo - pad
    else:
        xp, base = x, 0
    xp = xp.astype(w.dtype)                      # bf16 matmul inputs (f32 accum)

    if im2col:
        # Lane-aligned only when Cin % 128 == 0: one deep MXU contraction.
        cols = jnp.concatenate(
            [xp[:, base + t: base + t + L, :] for t in range(k)], axis=-1)
        acc = jnp.dot(cols.reshape(TB * L, k * cin), w,
                      preferred_element_type=jnp.float32)
    else:
        # Per-tap accumulation: avoids assembling a lane-misaligned k*Cin slab.
        acc = jnp.zeros((TB * L, cout), jnp.float32)
        for t in range(k):
            xt = xp[:, base + t: base + t + L, :].reshape(TB * L, cin)
            acc = acc + jnp.dot(xt, w[t], preferred_element_type=jnp.float32)

    y = jnp.maximum(acc + aff[0:1, :], 0.0)      # conv bias + ReLU
    y = y * aff[1:2, :] + aff[2:3, :]            # folded BatchNorm1d (eval)
    return y.reshape(TB, L, cout)


def fused_cnn_kernel(x_ref,
                     w1_ref, a1_ref, w2_ref, a2_ref, w3_ref, a3_ref,
                     fcw_ref, fcb_ref, o_ref, *, ks, im2col):
    """One batch tile: conv1/2/3 (+ReLU+BN) -> global max pool -> Linear(32, 1)."""
    a = x_ref[...]                                                   # (TB, L, E)
    a = _conv_relu_bn(a, w1_ref[...], a1_ref[...], k=ks[0], im2col=im2col[0])
    a = _conv_relu_bn(a, w2_ref[...], a2_ref[...], k=ks[1], im2col=im2col[1])
    a = _conv_relu_bn(a, w3_ref[...], a3_ref[...], k=ks[2], im2col=im2col[2])
    pooled = jnp.max(a, axis=1)                  # AdaptiveMaxPool1d(1) -> (TB, 32)
    # Linear(32 -> 1) as a VPU multiply + lane reduction (a 32x1 MXU pass is waste).
    logit = jnp.sum(pooled * fcw_ref[...], axis=-1, keepdims=True) + fcb_ref[...]
    o_ref[...] = logit.reshape(o_ref.shape).astype(o_ref.dtype)      # (1, TB, 1)


# ----------------------------- wrapper ----------------------------------------


def _auto_batch_tile(B, L):
    """Pick TB so M = TB*L is ~256..1024 rows, with >= 2 grid steps when possible."""
    tb = max(1, min(B, 1024 // max(L, 1)))            # cap M (~1024 rows) for VMEM
    tb = max(tb, min(B, -(-256 // max(L, 1))))        # aim for M >= 256 if B allows
    if tb >= B and B > 1 and ((B + 1) // 2) * L >= 256:
        tb = (B + 1) // 2                             # let v7x's 2 TCs split the grid
    return max(tb, 1)


def simple_cnn_forward(token_ids, params, *, batch_tile=None, use_bf16_matmul=True):
    """token_ids: (B, L) int32 -> (B,) float32 logits (eval mode)."""
    emb = params["embedding"]
    B, L = token_ids.shape
    E = emb.shape[1]
    wdt = jnp.bfloat16 if use_bf16_matmul else jnp.float32

    # Embedding lookup (tiny XLA gather); channels-last replaces permute(0, 2, 1).
    # Streaming the activation in the matmul dtype halves the kernel's input DMA.
    x = jnp.take(emb, token_ids, axis=0).astype(wdt)                 # (B, L, E)

    TB = min(batch_tile, B) if batch_tile else _auto_batch_tile(B, L)
    nt = -(-B // TB)
    Bp = nt * TB
    if Bp != B:                                       # pad batch to a tile multiple;
        x = jnp.pad(x, ((0, Bp - B), (0, 0), (0, 0))) # padded rows sliced off below

    w1, b1, s1, h1 = params["conv1"]
    w2, b2, s2, h2 = params["conv2"]
    w3, b3, s3, h3 = params["conv3"]
    ks = (w1.shape[0], w2.shape[0], w3.shape[0])
    cins = (w1.shape[1], w2.shape[1], w3.shape[1])
    # Deep im2col matmul only when Cin is lane-aligned (multiple of 128);
    # otherwise per-tap accumulation (no lane-misaligned k*Cin concat).
    im2col = tuple(c % 128 == 0 for c in cins)

    def pack_w(w, use_cols):
        return (w.reshape(-1, w.shape[2]) if use_cols else w).astype(wdt)

    ws = [pack_w(w, f) for w, f in zip((w1, w2, w3), im2col)]
    affs = [jnp.stack([b, s, h]).astype(jnp.float32)                 # (3, Cout)
            for b, s, h in ((b1, s1, h1), (b2, s2, h2), (b3, s3, h3))]
    fcw = params["fc_w"].reshape(1, -1).astype(jnp.float32)          # (1, 32)
    fcb = params["fc_b"].reshape(1, 1).astype(jnp.float32)           # (1, 1)

    def const(a):
        zeros = (0,) * a.ndim
        return pl.BlockSpec(a.shape, lambda i: zeros)

    out = pl.pallas_call(
        functools.partial(fused_cnn_kernel, ks=ks, im2col=im2col),
        out_shape=jax.ShapeDtypeStruct((nt, TB, 1), jnp.float32),
        grid=(nt,),
        in_specs=[
            pl.BlockSpec((TB, L, E), lambda i: (i, 0, 0)),
            const(ws[0]), const(affs[0]),
            const(ws[1]), const(affs[1]),
            const(ws[2]), const(affs[2]),
            const(fcw), const(fcb),
        ],
        out_specs=pl.BlockSpec((1, TB, 1), lambda i: (i, 0, 0)),
        compiler_params=pltpu.CompilerParams(
            dimension_semantics=("parallel",),
            vmem_limit_bytes=32 * 1024 * 1024),
    )(x, ws[0], affs[0], ws[1], affs[1], ws[2], affs[2], fcw, fcb)
    return out.reshape(Bp)[:B]                        # .squeeze(-1)


# ----------------------------- reference (same matmul dtypes) -----------------


def simple_cnn_reference(token_ids, params, *, use_bf16_matmul=True):
    """Pure-JAX forward mirroring the kernel's dtype choices (for self-check)."""
    wdt = jnp.bfloat16 if use_bf16_matmul else jnp.float32
    x = jnp.take(params["embedding"], token_ids, axis=0).astype(wdt)
    L = x.shape[1]
    for name in ("conv1", "conv2", "conv3"):
        w, b, scale, shift = params[name]
        k = w.shape[0]
        pad = k // 2
        xp = jnp.pad(x.astype(wdt), ((0, 0), (pad, pad), (0, 0)))
        y = jnp.zeros(x.shape[:2] + (w.shape[2],), jnp.float32)
        for t in range(k):
            y = y + jnp.einsum("ble,eo->blo", xp[:, t:t + L, :], w[t].astype(wdt),
                               preferred_element_type=jnp.float32)
        x = jnp.maximum(y + b, 0.0) * scale + shift   # Conv -> ReLU -> BN (eval)
    pooled = jnp.max(x, axis=1)                        # (B, 32)
    return (pooled @ params["fc_w"] + params["fc_b"])[:, 0]


# ----------------------------- parameters -------------------------------------

BN_EPS = 1e-5


def _conv_layer_params(key, k, cin, cout):
    kw, kb, kg, kbeta, km, kv = jax.random.split(key, 6)
    bound = 1.0 / jnp.sqrt(cin * k)
    # W_pallas[t, ci, co] corresponds to PyTorch Conv1d weight[co, ci, t].
    w = jax.random.uniform(kw, (k, cin, cout), jnp.float32, -bound, bound)
    b = jax.random.uniform(kb, (cout,), jnp.float32, -bound, bound)
    gamma = 1.0 + 0.1 * jax.random.normal(kg, (cout,), jnp.float32)
    beta = 0.1 * jax.random.normal(kbeta, (cout,), jnp.float32)
    running_mean = 0.1 * jax.random.normal(km, (cout,), jnp.float32)
    running_var = 1.0 + 0.1 * jnp.abs(jax.random.normal(kv, (cout,), jnp.float32))
    scale = gamma / jnp.sqrt(running_var + BN_EPS)     # fold BN into affine
    shift = beta - running_mean * scale
    return w, b, scale, shift


def init_params(key, vocab_size, embedding_dim):
    k_emb, k1, k2, k3, kfw, kfb = jax.random.split(key, 6)
    embedding = jax.random.normal(k_emb, (vocab_size, embedding_dim), jnp.float32)
    return {
        "embedding": embedding,
        "conv1": _conv_layer_params(k1, 11, embedding_dim, 128),
        "conv2": _conv_layer_params(k2, 7, 128, 64),
        "conv3": _conv_layer_params(k3, 5, 64, 32),
        "fc_w": jax.random.uniform(kfw, (32, 1), jnp.float32,
                                   -1.0 / jnp.sqrt(32.0), 1.0 / jnp.sqrt(32.0)),
        "fc_b": jax.random.uniform(kfb, (1,), jnp.float32,
                                   -1.0 / jnp.sqrt(32.0), 1.0 / jnp.sqrt(32.0)),
    }


# ----------------------------- main --------------------------------------------

if __name__ == "__main__":
    B, L = 2, 16
    vocab_size, embedding_dim = 16, 32

    key = jax.random.PRNGKey(0)
    k_params, k_ids = jax.random.split(key)
    params = init_params(k_params, vocab_size, embedding_dim)
    token_ids = jax.random.randint(k_ids, (B, L), 0, vocab_size, dtype=jnp.int32)

    out = simple_cnn_forward(token_ids, params)
    out = jax.block_until_ready(out)
    assert out.shape == (B,) and out.dtype == jnp.float32

    ref = jax.block_until_ready(simple_cnn_reference(token_ids, params))
    assert jnp.allclose(out, ref, rtol=2e-3, atol=2e-3), (out, ref)
    print("KERNEL_OK")
</pallas_src>

<mosaic_0001>
module attributes {stable_mosaic.version = 11 : i64} {
  func.func @fused_cnn_kernel(%arg0: i32, %arg1: memref<2x16x32xbf16, #tpu.memory_space<vmem>>, %arg2: memref<11x32x128xbf16, #tpu.memory_space<vmem>>, %arg3: memref<3x128xf32, #tpu.memory_space<vmem>>, %arg4: memref<896x64xbf16, #tpu.memory_space<vmem>>, %arg5: memref<3x64xf32, #tpu.memory_space<vmem>>, %arg6: memref<5x64x32xbf16, #tpu.memory_space<vmem>>, %arg7: memref<3x32xf32, #tpu.memory_space<vmem>>, %arg8: memref<1x32xf32, #tpu.memory_space<vmem>>, %arg9: memref<1x1xf32, #tpu.memory_space<vmem>>, %arg10: memref<1x2x1xf32, #tpu.memory_space<vmem>>) attributes {dimension_semantics = [#tpu.dimension_semantics<parallel>], iteration_bounds = array<i64: 1>, scalar_prefetch = 0 : i64, scratch_operands = 0 : i64, tpu.core_type = #tpu.core_type<tc>, window_params = [{transform_indices = @transform_0, window_bounds = array<i64: 2, 16, 32>}, {pipeline_mode = #tpu.pipeline_mode<synchronous>, transform_indices = @transform_1, window_bounds = array<i64: 11, 32, 128>}, {pipeline_mode = #tpu.pipeline_mode<synchronous>, transform_indices = @transform_2, window_bounds = array<i64: 3, 128>}, {pipeline_mode = #tpu.pipeline_mode<synchronous>, transform_indices = @transform_3, window_bounds = array<i64: 896, 64>}, {pipeline_mode = #tpu.pipeline_mode<synchronous>, transform_indices = @transform_4, window_bounds = array<i64: 3, 64>}, {pipeline_mode = #tpu.pipeline_mode<synchronous>, transform_indices = @transform_5, window_bounds = array<i64: 5, 64, 32>}, {pipeline_mode = #tpu.pipeline_mode<synchronous>, transform_indices = @transform_6, window_bounds = array<i64: 3, 32>}, {pipeline_mode = #tpu.pipeline_mode<synchronous>, transform_indices = @transform_7, window_bounds = array<i64: 1, 32>}, {pipeline_mode = #tpu.pipeline_mode<synchronous>, transform_indices = @transform_8, window_bounds = array<i64: 1, 1>}, {transform_indices = @transform_9, window_bounds = array<i64: 1, 2, 1>}]} {
    %c0 = arith.constant 0 : index
    %c0_0 = arith.constant 0 : index
    %c0_1 = arith.constant 0 : index
    %0 = vector.load %arg1[%c0, %c0_0, %c0_1] : memref<2x16x32xbf16, #tpu.memory_space<vmem>>, vector<2x16x32xbf16>
    %c0_2 = arith.constant 0 : index
    %c0_3 = arith.constant 0 : index
    %c0_4 = arith.constant 0 : index
    %1 = vector.load %arg2[%c0_2, %c0_3, %c0_4] : memref<11x32x128xbf16, #tpu.memory_space<vmem>>, vector<11x32x128xbf16>
    %c0_5 = arith.constant 0 : index
    %c0_6 = arith.constant 0 : index
    %2 = vector.load %arg3[%c0_5, %c0_6] : memref<3x128xf32, #tpu.memory_space<vmem>>, vector<3x128xf32>
    %cst = arith.constant 0.000000e+00 : bf16
    %3 = vector.broadcast %cst : bf16 to vector<2x8x32xbf16>
    %4 = tpu.concatenate %3, %0, %3 in 1 : vector<2x8x32xbf16>, vector<2x16x32xbf16>, vector<2x8x32xbf16> -> vector<2x32x32xbf16>
    %cst_7 = arith.constant 0.000000e+00 : f32
    %5 = vector.broadcast %cst_7 : f32 to vector<32x128xf32>
    %6 = vector.extract_strided_slice %4 {offsets = [0, 3, 0], sizes = [2, 16, 32], strides = [1, 1, 1]} : vector<2x32x32xbf16> to vector<2x16x32xbf16>
    %7 = vector.shape_cast %6 : vector<2x16x32xbf16> to vector<32x32xbf16>
    %8 = vector.extract_strided_slice %1 {offsets = [0, 0, 0], sizes = [1, 32, 128], strides = [1, 1, 1]} : vector<11x32x128xbf16> to vector<1x32x128xbf16>
    %9 = vector.shape_cast %8 : vector<1x32x128xbf16> to vector<32x128xbf16>
    %cst_8 = arith.constant dense<0.000000e+00> : vector<32x128xf32>
    %10 = tpu.matmul %7, %9, %cst_8 {dimension_numbers = #tpu.dot_dimension_numbers<[1], [0], [0], [1], [0, 0, 1, 1], [], []>} : vector<32x32xbf16>, vector<32x128xbf16>, vector<32x128xf32> -> vector<32x128xf32>
    %11 = arith.addf %5, %10 : vector<32x128xf32>
    %12 = vector.extract_strided_slice %4 {offsets = [0, 4, 0], sizes = [2, 16, 32], strides = [1, 1, 1]} : vector<2x32x32xbf16> to vector<2x16x32xbf16>
    %13 = vector.shape_cast %12 : vector<2x16x32xbf16> to vector<32x32xbf16>
    %14 = vector.extract_strided_slice %1 {offsets = [1, 0, 0], sizes = [1, 32, 128], strides = [1, 1, 1]} : vector<11x32x128xbf16> to vector<1x32x128xbf16>
    %15 = vector.shape_cast %14 : vector<1x32x128xbf16> to vector<32x128xbf16>
    %cst_9 = arith.constant dense<0.000000e+00> : vector<32x128xf32>
    %16 = tpu.matmul %13, %15, %cst_9 {dimension_numbers = #tpu.dot_dimension_numbers<[1], [0], [0], [1], [0, 0, 1, 1], [], []>} : vector<32x32xbf16>, vector<32x128xbf16>, vector<32x128xf32> -> vector<32x128xf32>
    %17 = arith.addf %11, %16 : vector<32x128xf32>
    %18 = vector.extract_strided_slice %4 {offsets = [0, 5, 0], sizes = [2, 16, 32], strides = [1, 1, 1]} : vector<2x32x32xbf16> to vector<2x16x32xbf16>
    %19 = vector.shape_cast %18 : vector<2x16x32xbf16> to vector<32x32xbf16>
    %20 = vector.extract_strided_slice %1 {offsets = [2, 0, 0], sizes = [1, 32, 128], strides = [1, 1, 1]} : vector<11x32x128xbf16> to vector<1x32x128xbf16>
    %21 = vector.shape_cast %20 : vector<1x32x128xbf16> to vector<32x128xbf16>
    %cst_10 = arith.constant dense<0.000000e+00> : vector<32x128xf32>
    %22 = tpu.matmul %19, %21, %cst_10 {dimension_numbers = #tpu.dot_dimension_numbers<[1], [0], [0], [1], [0, 0, 1, 1], [], []>} : vector<32x32xbf16>, vector<32x128xbf16>, vector<32x128xf32> -> vector<32x128xf32>
    %23 = arith.addf %17, %22 : vector<32x128xf32>
    %24 = vector.extract_strided_slice %4 {offsets = [0, 6, 0], sizes = [2, 16, 32], strides = [1, 1, 1]} : vector<2x32x32xbf16> to vector<2x16x32xbf16>
    %25 = vector.shape_cast %24 : vector<2x16x32xbf16> to vector<32x32xbf16>
    %26 = vector.extract_strided_slice %1 {offsets = [3, 0, 0], sizes = [1, 32, 128], strides = [1, 1, 1]} : vector<11x32x128xbf16> to vector<1x32x128xbf16>
    %27 = vector.shape_cast %26 : vector<1x32x128xbf16> to vector<32x128xbf16>
    %cst_11 = arith.constant dense<0.000000e+00> : vector<32x128xf32>
    %28 = tpu.matmul %25, %27, %cst_11 {dimension_numbers = #tpu.dot_dimension_numbers<[1], [0], [0], [1], [0, 0, 1, 1], [], []>} : vector<32x32xbf16>, vector<32x128xbf16>, vector<32x128xf32> -> vector<32x128xf32>
    %29 = arith.addf %23, %28 : vector<32x128xf32>
    %30 = vector.extract_strided_slice %4 {offsets = [0, 7, 0], sizes = [2, 16, 32], strides = [1, 1, 1]} : vector<2x32x32xbf16> to vector<2x16x32xbf16>
    %31 = vector.shape_cast %30 : vector<2x16x32xbf16> to vector<32x32xbf16>
    %32 = vector.extract_strided_slice %1 {offsets = [4, 0, 0], sizes = [1, 32, 128], strides = [1, 1, 1]} : vector<11x32x128xbf16> to vector<1x32x128xbf16>
    %33 = vector.shape_cast %32 : vector<1x32x128xbf16> to vector<32x128xbf16>
    %cst_12 = arith.constant dense<0.000000e+00> : vector<32x128xf32>
    %34 = tpu.matmul %31, %33, %cst_12 {dimension_numbers = #tpu.dot_dimension_numbers<[1], [0], [0], [1], [0, 0, 1, 1], [], []>} : vector<32x32xbf16>, vector<32x128xbf16>, vector<32x128xf32> -> vector<32x128xf32>
    %35 = arith.addf %29, %34 : vector<32x128xf32>
    %36 = vector.extract_strided_slice %4 {offsets = [0, 8, 0], sizes = [2, 16, 32], strides = [1, 1, 1]} : vector<2x32x32xbf16> to vector<2x16x32xbf16>
    %37 = vector.shape_cast %36 : vector<2x16x32xbf16> to vector<32x32xbf16>
    %38 = vector.extract_strided_slice %1 {offsets = [5, 0, 0], sizes = [1, 32, 128], strides = [1, 1, 1]} : vector<11x32x128xbf16> to vector<1x32x128xbf16>
    %39 = vector.shape_cast %38 : vector<1x32x128xbf16> to vector<32x128xbf16>
    %cst_13 = arith.constant dense<0.000000e+00> : vector<32x128xf32>
    %40 = tpu.matmul %37, %39, %cst_13 {dimension_numbers = #tpu.dot_dimension_numbers<[1], [0], [0], [1], [0, 0, 1, 1], [], []>} : vector<32x32xbf16>, vector<32x128xbf16>, vector<32x128xf32> -> vector<32x128xf32>
    %41 = arith.addf %35, %40 : vector<32x128xf32>
    %42 = vector.extract_strided_slice %4 {offsets = [0, 9, 0], sizes = [2, 16, 32], strides = [1, 1, 1]} : vector<2x32x32xbf16> to vector<2x16x32xbf16>
    %43 = vector.shape_cast %42 : vector<2x16x32xbf16> to vector<32x32xbf16>
    %44 = vector.extract_strided_slice %1 {offsets = [6, 0, 0], sizes = [1, 32, 128], strides = [1, 1, 1]} : vector<11x32x128xbf16> to vector<1x32x128xbf16>
    %45 = vector.shape_cast %44 : vector<1x32x128xbf16> to vector<32x128xbf16>
    %cst_14 = arith.constant dense<0.000000e+00> : vector<32x128xf32>
    %46 = tpu.matmul %43, %45, %cst_14 {dimension_numbers = #tpu.dot_dimension_numbers<[1], [0], [0], [1], [0, 0, 1, 1], [], []>} : vector<32x32xbf16>, vector<32x128xbf16>, vector<32x128xf32> -> vector<32x128xf32>
    %47 = arith.addf %41, %46 : vector<32x128xf32>
    %48 = vector.extract_strided_slice %4 {offsets = [0, 10, 0], sizes = [2, 16, 32], strides = [1, 1, 1]} : vector<2x32x32xbf16> to vector<2x16x32xbf16>
    %49 = vector.shape_cast %48 : vector<2x16x32xbf16> to vector<32x32xbf16>
    %50 = vector.extract_strided_slice %1 {offsets = [7, 0, 0], sizes = [1, 32, 128], strides = [1, 1, 1]} : vector<11x32x128xbf16> to vector<1x32x128xbf16>
    %51 = vector.shape_cast %50 : vector<1x32x128xbf16> to vector<32x128xbf16>
    %cst_15 = arith.constant dense<0.000000e+00> : vector<32x128xf32>
    %52 = tpu.matmul %49, %51, %cst_15 {dimension_numbers = #tpu.dot_dimension_numbers<[1], [0], [0], [1], [0, 0, 1, 1], [], []>} : vector<32x32xbf16>, vector<32x128xbf16>, vector<32x128xf32> -> vector<32x128xf32>
    %53 = arith.addf %47, %52 : vector<32x128xf32>
    %54 = vector.extract_strided_slice %4 {offsets = [0, 11, 0], sizes = [2, 16, 32], strides = [1, 1, 1]} : vector<2x32x32xbf16> to vector<2x16x32xbf16>
    %55 = vector.shape_cast %54 : vector<2x16x32xbf16> to vector<32x32xbf16>
    %56 = vector.extract_strided_slice %1 {offsets = [8, 0, 0], sizes = [1, 32, 128], strides = [1, 1, 1]} : vector<11x32x128xbf16> to vector<1x32x128xbf16>
    %57 = vector.shape_cast %56 : vector<1x32x128xbf16> to vector<32x128xbf16>
    %cst_16 = arith.constant dense<0.000000e+00> : vector<32x128xf32>
    %58 = tpu.matmul %55, %57, %cst_16 {dimension_numbers = #tpu.dot_dimension_numbers<[1], [0], [0], [1], [0, 0, 1, 1], [], []>} : vector<32x32xbf16>, vector<32x128xbf16>, vector<32x128xf32> -> vector<32x128xf32>
    %59 = arith.addf %53, %58 : vector<32x128xf32>
    %60 = vector.extract_strided_slice %4 {offsets = [0, 12, 0], sizes = [2, 16, 32], strides = [1, 1, 1]} : vector<2x32x32xbf16> to vector<2x16x32xbf16>
    %61 = vector.shape_cast %60 : vector<2x16x32xbf16> to vector<32x32xbf16>
    %62 = vector.extract_strided_slice %1 {offsets = [9, 0, 0], sizes = [1, 32, 128], strides = [1, 1, 1]} : vector<11x32x128xbf16> to vector<1x32x128xbf16>
    %63 = vector.shape_cast %62 : vector<1x32x128xbf16> to vector<32x128xbf16>
    %cst_17 = arith.constant dense<0.000000e+00> : vector<32x128xf32>
    %64 = tpu.matmul %61, %63, %cst_17 {dimension_numbers = #tpu.dot_dimension_numbers<[1], [0], [0], [1], [0, 0, 1, 1], [], []>} : vector<32x32xbf16>, vector<32x128xbf16>, vector<32x128xf32> -> vector<32x128xf32>
    %65 = arith.addf %59, %64 : vector<32x128xf32>
    %66 = vector.extract_strided_slice %4 {offsets = [0, 13, 0], sizes = [2, 16, 32], strides = [1, 1, 1]} : vector<2x32x32xbf16> to vector<2x16x32xbf16>
    %67 = vector.shape_cast %66 : vector<2x16x32xbf16> to vector<32x32xbf16>
    %68 = vector.extract_strided_slice %1 {offsets = [10, 0, 0], sizes = [1, 32, 128], strides = [1, 1, 1]} : vector<11x32x128xbf16> to vector<1x32x128xbf16>
    %69 = vector.shape_cast %68 : vector<1x32x128xbf16> to vector<32x128xbf16>
    %cst_18 = arith.constant dense<0.000000e+00> : vector<32x128xf32>
    %70 = tpu.matmul %67, %69, %cst_18 {dimension_numbers = #tpu.dot_dimension_numbers<[1], [0], [0], [1], [0, 0, 1, 1], [], []>} : vector<32x32xbf16>, vector<32x128xbf16>, vector<32x128xf32> -> vector<32x128xf32>
    %71 = arith.addf %65, %70 : vector<32x128xf32>
    %72 = vector.extract_strided_slice %2 {offsets = [0, 0], sizes = [1, 128], strides = [1, 1]} : vector<3x128xf32> to vector<1x128xf32>
    %73 = vector.broadcast %72 : vector<1x128xf32> to vector<32x128xf32>
    %74 = arith.addf %71, %73 : vector<32x128xf32>
    %cst_19 = arith.constant 0.000000e+00 : f32
    %75 = vector.broadcast %cst_19 : f32 to vector<32x128xf32>
    %76 = arith.maximumf %74, %75 : vector<32x128xf32>
    %77 = vector.extract_strided_slice %2 {offsets = [1, 0], sizes = [1, 128], strides = [1, 1]} : vector<3x128xf32> to vector<1x128xf32>
    %78 = vector.broadcast %77 : vector<1x128xf32> to vector<32x128xf32>
    %79 = arith.mulf %76, %78 : vector<32x128xf32>
    %80 = vector.extract_strided_slice %2 {offsets = [2, 0], sizes = [1, 128], strides = [1, 1]} : vector<3x128xf32> to vector<1x128xf32>
    %81 = vector.broadcast %80 : vector<1x128xf32> to vector<32x128xf32>
    %82 = arith.addf %79, %81 : vector<32x128xf32>
    %83 = vector.shape_cast %82 : vector<32x128xf32> to vector<2x16x128xf32>
    %c0_20 = arith.constant 0 : index
    %c0_21 = arith.constant 0 : index
    %84 = vector.load %arg4[%c0_20, %c0_21] : memref<896x64xbf16, #tpu.memory_space<vmem>>, vector<896x64xbf16>
    %c0_22 = arith.constant 0 : index
    %c0_23 = arith.constant 0 : index
    %85 = vector.load %arg5[%c0_22, %c0_23] : memref<3x64xf32, #tpu.memory_space<vmem>>, vector<3x64xf32>
    %cst_24 = arith.constant 0.000000e+00 : f32
    %86 = vector.broadcast %cst_24 : f32 to vector<2x8x128xf32>
    %87 = tpu.concatenate %86, %83, %86 in 1 : vector<2x8x128xf32>, vector<2x16x128xf32>, vector<2x8x128xf32> -> vector<2x32x128xf32>
    %88 = arith.truncf %87 : vector<2x32x128xf32> to vector<2x32x128xbf16>
    %89 = vector.extract_strided_slice %88 {offsets = [0, 5, 0], sizes = [2, 16, 128], strides = [1, 1, 1]} : vector<2x32x128xbf16> to vector<2x16x128xbf16>
    %90 = vector.extract_strided_slice %88 {offsets = [0, 6, 0], sizes = [2, 16, 128], strides = [1, 1, 1]} : vector<2x32x128xbf16> to vector<2x16x128xbf16>
    %91 = vector.extract_strided_slice %88 {offsets = [0, 7, 0], sizes = [2, 16, 128], strides = [1, 1, 1]} : vector<2x32x128xbf16> to vector<2x16x128xbf16>
    %92 = vector.extract_strided_slice %88 {offsets = [0, 8, 0], sizes = [2, 16, 128], strides = [1, 1, 1]} : vector<2x32x128xbf16> to vector<2x16x128xbf16>
    %93 = vector.extract_strided_slice %88 {offsets = [0, 9, 0], sizes = [2, 16, 128], strides = [1, 1, 1]} : vector<2x32x128xbf16> to vector<2x16x128xbf16>
    %94 = vector.extract_strided_slice %88 {offsets = [0, 10, 0], sizes = [2, 16, 128], strides = [1, 1, 1]} : vector<2x32x128xbf16> to vector<2x16x128xbf16>
    %95 = vector.extract_strided_slice %88 {offsets = [0, 11, 0], sizes = [2, 16, 128], strides = [1, 1, 1]} : vector<2x32x128xbf16> to vector<2x16x128xbf16>
    %96 = tpu.concatenate %89, %90, %91, %92, %93, %94, %95 in 2 : vector<2x16x128xbf16>, vector<2x16x128xbf16>, vector<2x16x128xbf16>, vector<2x16x128xbf16>, vector<2x16x128xbf16>, vector<2x16x128xbf16>, vector<2x16x128xbf16> -> vector<2x16x896xbf16>
    %97 = vector.shape_cast %96 : vector<2x16x896xbf16> to vector<32x896xbf16>
    %cst_25 = arith.constant dense<0.000000e+00> : vector<32x64xf32>
    %98 = tpu.matmul %97, %84, %cst_25 {dimension_numbers = #tpu.dot_dimension_numbers<[1], [0], [0], [1], [0, 0, 1, 1], [], []>} : vector<32x896xbf16>, vector<896x64xbf16>, vector<32x64xf32> -> vector<32x64xf32>
    %99 = vector.extract_strided_slice %85 {offsets = [0, 0], sizes = [1, 64], strides = [1, 1]} : vector<3x64xf32> to vector<1x64xf32>
    %100 = vector.broadcast %99 : vector<1x64xf32> to vector<32x64xf32>
    %101 = arith.addf %98, %100 : vector<32x64xf32>
    %cst_26 = arith.constant 0.000000e+00 : f32
    %102 = vector.broadcast %cst_26 : f32 to vector<32x64xf32>
    %103 = arith.maximumf %101, %102 : vector<32x64xf32>
    %104 = vector.extract_strided_slice %85 {offsets = [1, 0], sizes = [1, 64], strides = [1, 1]} : vector<3x64xf32> to vector<1x64xf32>
    %105 = vector.broadcast %104 : vector<1x64xf32> to vector<32x64xf32>
    %106 = arith.mulf %103, %105 : vector<32x64xf32>
    %107 = vector.extract_strided_slice %85 {offsets = [2, 0], sizes = [1, 64], strides = [1, 1]} : vector<3x64xf32> to vector<1x64xf32>
    %108 = vector.broadcast %107 : vector<1x64xf32> to vector<32x64xf32>
    %109 = arith.addf %106, %108 : vector<32x64xf32>
    %110 = vector.shape_cast %109 : vector<32x64xf32> to vector<2x16x64xf32>
    %c0_27 = arith.constant 0 : index
    %c0_28 = arith.constant 0 : index
    %c0_29 = arith.constant 0 : index
    %111 = vector.load %arg6[%c0_27, %c0_28, %c0_29] : memref<5x64x32xbf16, #tpu.memory_space<vmem>>, vector<5x64x32xbf16>
    %c0_30 = arith.constant 0 : index
    %c0_31 = arith.constant 0 : index
    %112 = vector.load %arg7[%c0_30, %c0_31] : memref<3x32xf32, #tpu.memory_space<vmem>>, vector<3x32xf32>
    %cst_32 = arith.constant 0.000000e+00 : f32
    %113 = vector.broadcast %cst_32 : f32 to vector<2x8x64xf32>
    %114 = tpu.concatenate %113, %110, %113 in 1 : vector<2x8x64xf32>, vector<2x16x64xf32>, vector<2x8x64xf32> -> vector<2x32x64xf32>
    %115 = arith.truncf %114 : vector<2x32x64xf32> to vector<2x32x64xbf16>
    %cst_33 = arith.constant 0.000000e+00 : f32
    %116 = vector.broadcast %cst_33 : f32 to vector<32x32xf32>
    %117 = vector.extract_strided_slice %115 {offsets = [0, 6, 0], sizes = [2, 16, 64], strides = [1, 1, 1]} : vector<2x32x64xbf16> to vector<2x16x64xbf16>
    %118 = vector.shape_cast %117 : vector<2x16x64xbf16> to vector<32x64xbf16>
    %119 = vector.extract_strided_slice %111 {offsets = [0, 0, 0], sizes = [1, 64, 32], strides = [1, 1, 1]} : vector<5x64x32xbf16> to vector<1x64x32xbf16>
    %120 = vector.shape_cast %119 : vector<1x64x32xbf16> to vector<64x32xbf16>
    %cst_34 = arith.constant dense<0.000000e+00> : vector<32x32xf32>
    %121 = tpu.matmul %118, %120, %cst_34 {dimension_numbers = #tpu.dot_dimension_numbers<[1], [0], [0], [1], [0, 0, 1, 1], [], []>} : vector<32x64xbf16>, vector<64x32xbf16>, vector<32x32xf32> -> vector<32x32xf32>
    %122 = arith.addf %116, %121 : vector<32x32xf32>
    %123 = vector.extract_strided_slice %115 {offsets = [0, 7, 0], sizes = [2, 16, 64], strides = [1, 1, 1]} : vector<2x32x64xbf16> to vector<2x16x64xbf16>
    %124 = vector.shape_cast %123 : vector<2x16x64xbf16> to vector<32x64xbf16>
    %125 = vector.extract_strided_slice %111 {offsets = [1, 0, 0], sizes = [1, 64, 32], strides = [1, 1, 1]} : vector<5x64x32xbf16> to vector<1x64x32xbf16>
    %126 = vector.shape_cast %125 : vector<1x64x32xbf16> to vector<64x32xbf16>
    %cst_35 = arith.constant dense<0.000000e+00> : vector<32x32xf32>
    %127 = tpu.matmul %124, %126, %cst_35 {dimension_numbers = #tpu.dot_dimension_numbers<[1], [0], [0], [1], [0, 0, 1, 1], [], []>} : vector<32x64xbf16>, vector<64x32xbf16>, vector<32x32xf32> -> vector<32x32xf32>
    %128 = arith.addf %122, %127 : vector<32x32xf32>
    %129 = vector.extract_strided_slice %115 {offsets = [0, 8, 0], sizes = [2, 16, 64], strides = [1, 1, 1]} : vector<2x32x64xbf16> to vector<2x16x64xbf16>
    %130 = vector.shape_cast %129 : vector<2x16x64xbf16> to vector<32x64xbf16>
    %131 = vector.extract_strided_slice %111 {offsets = [2, 0, 0], sizes = [1, 64, 32], strides = [1, 1, 1]} : vector<5x64x32xbf16> to vector<1x64x32xbf16>
    %132 = vector.shape_cast %131 : vector<1x64x32xbf16> to vector<64x32xbf16>
    %cst_36 = arith.constant dense<0.000000e+00> : vector<32x32xf32>
    %133 = tpu.matmul %130, %132, %cst_36 {dimension_numbers = #tpu.dot_dimension_numbers<[1], [0], [0], [1], [0, 0, 1, 1], [], []>} : vector<32x64xbf16>, vector<64x32xbf16>, vector<32x32xf32> -> vector<32x32xf32>
    %134 = arith.addf %128, %133 : vector<32x32xf32>
    %135 = vector.extract_strided_slice %115 {offsets = [0, 9, 0], sizes = [2, 16, 64], strides = [1, 1, 1]} : vector<2x32x64xbf16> to vector<2x16x64xbf16>
    %136 = vector.shape_cast %135 : vector<2x16x64xbf16> to vector<32x64xbf16>
    %137 = vector.extract_strided_slice %111 {offsets = [3, 0, 0], sizes = [1, 64, 32], strides = [1, 1, 1]} : vector<5x64x32xbf16> to vector<1x64x32xbf16>
    %138 = vector.shape_cast %137 : vector<1x64x32xbf16> to vector<64x32xbf16>
    %cst_37 = arith.constant dense<0.000000e+00> : vector<32x32xf32>
    %139 = tpu.matmul %136, %138, %cst_37 {dimension_numbers = #tpu.dot_dimension_numbers<[1], [0], [0], [1], [0, 0, 1, 1], [], []>} : vector<32x64xbf16>, vector<64x32xbf16>, vector<32x32xf32> -> vector<32x32xf32>
    %140 = arith.addf %134, %139 : vector<32x32xf32>
    %141 = vector.extract_strided_slice %115 {offsets = [0, 10, 0], sizes = [2, 16, 64], strides = [1, 1, 1]} : vector<2x32x64xbf16> to vector<2x16x64xbf16>
    %142 = vector.shape_cast %141 : vector<2x16x64xbf16> to vector<32x64xbf16>
    %143 = vector.extract_strided_slice %111 {offsets = [4, 0, 0], sizes = [1, 64, 32], strides = [1, 1, 1]} : vector<5x64x32xbf16> to vector<1x64x32xbf16>
    %144 = vector.shape_cast %143 : vector<1x64x32xbf16> to vector<64x32xbf16>
    %cst_38 = arith.constant dense<0.000000e+00> : vector<32x32xf32>
    %145 = tpu.matmul %142, %144, %cst_38 {dimension_numbers = #tpu.dot_dimension_numbers<[1], [0], [0], [1], [0, 0, 1, 1], [], []>} : vector<32x64xbf16>, vector<64x32xbf16>, vector<32x32xf32> -> vector<32x32xf32>
    %146 = arith.addf %140, %145 : vector<32x32xf32>
    %147 = vector.extract_strided_slice %112 {offsets = [0, 0], sizes = [1, 32], strides = [1, 1]} : vector<3x32xf32> to vector<1x32xf32>
    %148 = vector.broadcast %147 : vector<1x32xf32> to vector<32x32xf32>
    %149 = arith.addf %146, %148 : vector<32x32xf32>
    %cst_39 = arith.constant 0.000000e+00 : f32
    %150 = vector.broadcast %cst_39 : f32 to vector<32x32xf32>
    %151 = arith.maximumf %149, %150 : vector<32x32xf32>
    %152 = vector.extract_strided_slice %112 {offsets = [1, 0], sizes = [1, 32], strides = [1, 1]} : vector<3x32xf32> to vector<1x32xf32>
    %153 = vector.broadcast %152 : vector<1x32xf32> to vector<32x32xf32>
    %154 = arith.mulf %151, %153 : vector<32x32xf32>
    %155 = vector.extract_strided_slice %112 {offsets = [2, 0], sizes = [1, 32], strides = [1, 1]} : vector<3x32xf32> to vector<1x32xf32>
    %156 = vector.broadcast %155 : vector<1x32xf32> to vector<32x32xf32>
    %157 = arith.addf %154, %156 : vector<32x32xf32>
    %158 = vector.shape_cast %157 : vector<32x32xf32> to vector<2x16x32xf32>
    %cst_40 = arith.constant dense<0xFF800000> : vector<2x32xf32>
    %159 = vector.multi_reduction <maximumf>, %158, %cst_40 [1] : vector<2x16x32xf32> to vector<2x32xf32>
    %c0_41 = arith.constant 0 : index
    %c0_42 = arith.constant 0 : index
    %160 = vector.load %arg8[%c0_41, %c0_42] : memref<1x32xf32, #tpu.memory_space<vmem>>, vector<1x32xf32>
    %161 = vector.broadcast %160 : vector<1x32xf32> to vector<2x32xf32>
    %162 = arith.mulf %159, %161 : vector<2x32xf32>
    %cst_43 = arith.constant dense<0.000000e+00> : vector<2xf32>
    %163 = vector.multi_reduction <add>, %162, %cst_43 [1] : vector<2x32xf32> to vector<2xf32>
    %164 = vector.shape_cast %163 : vector<2xf32> to vector<2x1xf32>
    %c0_44 = arith.constant 0 : index
    %c0_45 = arith.constant 0 : index
    %165 = vector.load %arg9[%c0_44, %c0_45] : memref<1x1xf32, #tpu.memory_space<vmem>>, vector<1x1xf32>
    %166 = vector.broadcast %165 : vector<1x1xf32> to vector<2x1xf32>
    %167 = arith.addf %164, %166 : vector<2x1xf32>
    %168 = vector.shape_cast %167 : vector<2x1xf32> to vector<1x2x1xf32>
    %c0_46 = arith.constant 0 : index
    %c0_47 = arith.constant 0 : index
    %c0_48 = arith.constant 0 : index
    %169 = vector.load %arg10[%c0_46, %c0_47, %c0_48] : memref<1x2x1xf32, #tpu.memory_space<vmem>>, vector<1x2x1xf32>
    tpu.vector_store %arg10[%c0_46, %c0_47, %c0_48], %168 {strides = array<i32>} : memref<1x2x1xf32, #tpu.memory_space<vmem>>, vector<1x2x1xf32>,
    return
  }
  func.func @transform_0(%arg0: i32) -> (i32, i32, i32) {
    %c0_i32 = arith.constant 0 : i32
    %c0_i32_0 = arith.constant 0 : i32
    %c0_i32_1 = arith.constant 0 : i32
    return %arg0, %c0_i32, %c0_i32_0 : i32, i32, i32
  }
  func.func @transform_1(%arg0: i32) -> (i32, i32, i32) {
    %c0_i32 = arith.constant 0 : i32
    %c0_i32_0 = arith.constant 0 : i32
    %c0_i32_1 = arith.constant 0 : i32
    %c0_i32_2 = arith.constant 0 : i32
    return %c0_i32, %c0_i32_0, %c0_i32_1 : i32, i32, i32
  }
  func.func @transform_2(%arg0: i32) -> (i32, i32) {
    %c0_i32 = arith.constant 0 : i32
    %c0_i32_0 = arith.constant 0 : i32
    %c0_i32_1 = arith.constant 0 : i32
    return %c0_i32, %c0_i32_0 : i32, i32
  }
  func.func @transform_3(%arg0: i32) -> (i32, i32) {
    %c0_i32 = arith.constant 0 : i32
    %c0_i32_0 = arith.constant 0 : i32
    %c0_i32_1 = arith.constant 0 : i32
    return %c0_i32, %c0_i32_0 : i32, i32
  }
  func.func @transform_4(%arg0: i32) -> (i32, i32) {
    %c0_i32 = arith.constant 0 : i32
    %c0_i32_0 = arith.constant 0 : i32
    %c0_i32_1 = arith.constant 0 : i32
    return %c0_i32, %c0_i32_0 : i32, i32
  }
  func.func @transform_5(%arg0: i32) -> (i32, i32, i32) {
    %c0_i32 = arith.constant 0 : i32
    %c0_i32_0 = arith.constant 0 : i32
    %c0_i32_1 = arith.constant 0 : i32
    %c0_i32_2 = arith.constant 0 : i32
    return %c0_i32, %c0_i32_0, %c0_i32_1 : i32, i32, i32
  }
  func.func @transform_6(%arg0: i32) -> (i32, i32) {
    %c0_i32 = arith.constant 0 : i32
    %c0_i32_0 = arith.constant 0 : i32
    %c0_i32_1 = arith.constant 0 : i32
    return %c0_i32, %c0_i32_0 : i32, i32
  }
  func.func @transform_7(%arg0: i32) -> (i32, i32) {
    %c0_i32 = arith.constant 0 : i32
    %c0_i32_0 = arith.constant 0 : i32
    %c0_i32_1 = arith.constant 0 : i32
    return %c0_i32, %c0_i32_0 : i32, i32
  }
  func.func @transform_8(%arg0: i32) -> (i32, i32) {
    %c0_i32 = arith.constant 0 : i32
    %c0_i32_0 = arith.constant 0 : i32
    %c0_i32_1 = arith.constant 0 : i32
    return %c0_i32, %c0_i32_0 : i32, i32
  }
  func.func @transform_9(%arg0: i32) -> (i32, i32, i32) {
    %c0_i32 = arith.constant 0 : i32
    %c0_i32_0 = arith.constant 0 : i32
    %c0_i32_1 = arith.constant 0 : i32
    return %arg0, %c0_i32, %c0_i32_0 : i32, i32, i32
  }
}

</mosaic_0001>

<bundles_post_ra>
// kernel: tpu_custom_call.1
= control target key start
LH: loop header
LB: loop body
LE: loop exit
PB: predicated region body
PF: predicated region fallthrough
CT: control target
= control target key end

     0   :  { %vm96_vm0 = vcmask 1043456   ;;  %vm141_vm1 = vcmask 1045504   ;;  %vm160_vm2 = vcmask 261120   ;;  %vm106_vm3 = vsmask.f32 6400  ;;  %s3454_s1 = inlined_call_operand.vmem [shape: bf16[11,32,128], index: 1, kind: input, shape index: {}]   ;;  %s3455_s0 = inlined_call_operand.vmem [shape: bf16[2,16,32], index: 0, kind: input, shape index: {}]   ;;  %s3456_s3 = inlined_call_operand.vmem [shape: bf16[896,64], index: 3, kind: input, shape index: {}]   ;;  %s3457_s2 = inlined_call_operand.vmem [shape: f32[3,128], index: 2, kind: input, shape index: {}]   ;;  %s3458_s4 = inlined_call_operand.vmem [shape: f32[3,64], index: 4, kind: input, shape index: {}]   ;;  %s3459_s5 = inlined_call_operand.vmem [shape: bf16[5,64,32], index: 5, kind: input, shape index: {}]   ;;  %s3460_s7 = inlined_call_operand.vmem [shape: f32[1,32], index: 7, kind: input, shape index: {}]   ;;  %s3461_s6 = inlined_call_operand.vmem [shape: f32[3,32], index: 6, kind: input, shape index: {}]   ;;  %s3462_s8 = inlined_call_operand.<no memory space> [shape: f32[1,1], index: 8, kind: input, shape index: {}]   ;;  %s3463_s9 = inlined_call_operand.vmem [shape: f32[1,2,1], index: 9, kind: output, shape index: {}]  }
   0x1   :  { %v2556_v0 = vld [vmem:[%s3454_s1 + $0x18] sm:$0xff]  ;;  %v2554_v1 = vld [vmem:[%s3454_s1 + $0x8] sm:$0xff]  ;;  %v2555_v4 = vld [vmem:[%s3454_s1 + $0x10] sm:$0xff]  ;;  %vm223_vm4 = vsmask.f32 5376  ;;  %vm279_vm5 = vcmask 1044480  }
   0x2   :  { %v2558_v2 = vld [vmem:[%s3454_s1 + $0x28] sm:$0xff]  ;;  %2660 = vmatpush.bf16.msra.mxu3 %v2556_v0  ;;  %173 = vmatpush.bf16.msra.mxu0 %v2556_v0  ;;  %v2652_v7 = vld [vmem:[%s3455_s0] sm:$0xff]   ;;  %v2564_v15 = vld [vmem:[%s3454_s1 + $0x58] sm:$0xff]  ;;  %vm327_vm6 = vsmask.f32 4352  ;;  %vm487_vm7 = vcmask 1042432  }
   0x3   :  { %v2659_v3 = vld [vmem:[%s3455_s0 + $0x8] sm:$0xff]   ;;  %210 = vmatpush.bf16.msra.mxu1 %v2554_v1  ;;  %262 = vmatpush.bf16.msra.mxu2 %v2558_v2  ;;  %v2553_v8 = vld [vmem:[%s3454_s1] sm:$0xff]  ;;  %v2653_v10 = vunpack.c.l.b16 %v2652_v7  ;;  %v2654_v11 = vunpack.c.h.b16 %v2652_v7  ;;  %v2560_v18 = vld [vmem:[%s3454_s1 + $0x38] sm:$0xff]  ;;  %vm591_vm8 = vcmask 1041408   ;;  %vm431_vm9 = vsmask.f32 3328 }
   0x4   :  { %v2657_v5 = vunpack.c.l.b16 %v2659_v3  ;;  %v2658_v6 = vunpack.c.h.b16 %v2659_v3  ;;  %v2557_v9 = vld [vmem:[%s3454_s1 + $0x20] sm:$0xff]  ;;  %v2566_v14 = vld [vmem:[%s3454_s1 + $0x68] sm:$0xff]  ;;  %v2563_v31 = vld [vmem:[%s3454_s1 + $0x50] sm:$0xff]  ;;  %vm639_vm10 = vsmask.f32 1280  ;;  %vm877_vm12 = vcmask 1046528  }
   0x5   :  { %v92_v16 = vpack.c.b16 %v2653_v10, %v2653_v10  ;;  %v93_v17 = vpack.c.b16 %v2654_v11, %v2654_v11  ;;  %v2562_v19 = vld [vmem:[%s3454_s1 + $0x48] sm:$0xff]  ;;  %v2565_v30 = vld [vmem:[%s3454_s1 + $0x60] sm:$0xff]  ;;  %v2559_v35 = vld [vmem:[%s3454_s1 + $0x30] sm:$0xff]  ;;  %vm535_vm11 = vsmask.f32 2304  ;;  %vm924_vm14 = vcmask 1040384  }
   0x6   :  { %v94_v12 = vpack.c.b16 %v2657_v5, %v2657_v5  ;;  %v95_v13 = vpack.c.b16 %v2658_v6, %v2658_v6  ;;  %2661 = vmatpush.bf16.msra.mxu3 %v2555_v4  ;;  %174 = vmatpush.bf16.msra.mxu0 %v2555_v4  ;;  %v2561_v36 = vld [vmem:[%s3454_s1 + $0x40] sm:$0xff]  ;;  %v2568_v41 = vld [vmem:[%s3454_s1 + $0x78] sm:$0xff]  ;;  %v2574_v59 = vld [vmem:[%s3454_s1 + $0xa8] sm:$0xff]  ;;  %vm846_vm13 = vsmask.f32 7424  ;;  %vm1679_vm15 = vcmask 1044484  }
   0x7   :  { %211 = vmatpush.bf16.msra.mxu1 %v2553_v8  ;;  %263 = vmatpush.bf16.msra.mxu2 %v2557_v9  ;;  %v2763_v24 = vsel %vm96_vm0, 0, %v92_v16  ;;  %v2766_v25 = vsel %vm96_vm0, %v93_v17, 0  ;;  %v2570_v60 = vld [vmem:[%s3454_s1 + $0x88] sm:$0xff]  ;;  %v2572_v61 = vld [vmem:[%s3454_s1 + $0x98] sm:$0xff]  ;;  %v2567_v0 = vld [vmem:[%s3454_s1 + $0x70] sm:$0xff] }
   0x8   :  { %v2755_v20 = vsel %vm96_vm0, 0, %v94_v12  ;;  %v2758_v21 = vsel %vm96_vm0, %v95_v13, 0  ;;  %v142_v26 = vrot.slane %v2763_v24, 2  ;;  %v143_v27 = vrot.slane %v2766_v25, 2 }
   0x9   :  { %v145_v22 = vrot.slane %v2755_v20, 2  ;;  %v146_v23 = vrot.slane %v2758_v21, 2  ;;  %v2771_v28 = vshrl.u32 %v2763_v24, 16  ;;  %v2774_v29 = vshll.u32 %v2763_v24, 16 }
   0xa   :  { %v2784_v33 = vshrl.u32 %v2766_v25, 16  ;;  %v2787_v34 = vshll.u32 %v2766_v25, 16  ;;  %310 = vmatpush.bf16.msrb.mxu3 %v2560_v18  ;;  %366 = vmatpush.bf16.msrb.mxu0 %v2562_v19  ;;  %v144_v37 = vsel %vm141_vm1, %v142_v26, %v143_v27  ;;  %v2813_v53 = vshrl.u32 %v2755_v20, 16 }
   0xb   :  { %470 = vmatpush.bf16.msrb.mxu2 %v2566_v14  ;;  %414 = vmatpush.bf16.msrb.mxu1 %v2564_v15  ;;  %v147_v32 = vsel %vm141_vm1, %v145_v22, %v146_v23  ;;  %v109_v38 = vrot.slane %v2771_v28, 1  ;;  %v112_v39 = vrot.slane %v2774_v29, 2  ;;  %v224_v40 = vrot.slane %v2771_v28, 2 }
   0xc   :  { %2136 = vmatmul.msk.bf16.vlgmr.msra.gmra.mxu3 %vm160_vm2, %v147_v32  ;;  %2135 = vmatmul.msk.bf16.vlgmr.msra.gmra.mxu0 %vm160_vm2, %v144_v37  ;;  %v116_v42 = vrot.slane %v2784_v33, 1  ;;  %v119_v43 = vrot.slane %v2787_v34, 2  ;;  %v225_v44 = vrot.slane %v2774_v29, 3  ;;  %v227_v45 = vrot.slane %v2784_v33, 2  ;;  %v2573_v32 = vld [vmem:[%s3454_s1 + $0xa0] sm:$0xff] }
   0xd   :  { %v113_v46 = vor.u32 %v112_v39, %v109_v38  ;;  %v228_v47 = vrot.slane %v2787_v34, 3  ;;  %v2816_v54 = vshll.u32 %v2755_v20, 16  ;;  %v2819_v55 = vshrl.u32 %v2758_v21, 16 }
   0xe   :  { %v120_v48 = vor.u32 %v119_v43, %v116_v42  ;;  %v226_v49 = vor.u32 %v225_v44, %v224_v40  ;;  %311 = vmatpush.bf16.msrb.mxu3 %v2559_v35  ;;  %367 = vmatpush.bf16.msrb.mxu0 %v2561_v36  ;;  %v2823_v56 = vshll.u32 %v2758_v21, 16  ;;  %v328_v57 = vrot.slane %v2771_v28, 3  ;;  %v2571_v35 = vld [vmem:[%s3454_s1 + $0x90] sm:$0xff] }
   0xf   :  { %471 = vmatpush.bf16.msrb.mxu2 %v2565_v30  ;;  %415 = vmatpush.bf16.msrb.mxu1 %v2563_v31  ;;  %v229_v50 = vor.u32 %v228_v47, %v227_v45  ;;  %v329_v58 = vrot.slane %v2774_v29, 4  ;;  %v331_v62 = vrot.slane %v2784_v33, 3  ;;  %v332_v63 = vrot.slane %v2787_v34, 4  ;;  %v2569_v31 = vld [vmem:[%s3454_s1 + $0x80] sm:$0xff] }
  0x10   :  { %v121_v51 = vsel %vm106_vm3, %v113_v46, %v120_v48  ;;  %v280_v1 = vrot.slane %v2763_v24, 3  ;;  %v281_v2 = vrot.slane %v2766_v25, 3  ;;  %v124_v5 = vrot.slane %v2813_v53, 1 }
  0x11   :  { %2145 = vmatmul.msk.bf16.vlgmr.msra.gmra.mxu1 %vm160_vm2, %v121_v51  ;;  %v230_v52 = vsel %vm223_vm4, %v226_v49, %v229_v50  ;;  %v330_v3 = vor.u32 %v329_v58, %v328_v57  ;;  %v333_v4 = vor.u32 %v332_v63, %v331_v62  ;;  %v127_v6 = vrot.slane %v2816_v54, 2 }
  0x12   :  { %518 = vmatpush.bf16.msra.mxu3 %v2568_v41  ;;  %2155 = vmatmul.msk.bf16.vlgmr.msra.gmra.mxu2 %vm160_vm2, %v230_v52  ;;  %v131_v7 = vrot.slane %v2819_v55, 1  ;;  %v134_v8 = vrot.slane %v2823_v56, 2  ;;  %v231_v9 = vrot.slane %v2813_v53, 2  ;;  %v232_v10 = vrot.slane %v2816_v54, 3 }
  0x13   :  { %678 = vmatpush.bf16.msra.mxu2 %v2574_v59  ;;  %574 = vmatpush.bf16.msra.mxu0 %v2570_v60  ;;  %v234_v11 = vrot.slane %v2819_v55, 2  ;;  %v235_v12 = vrot.slane %v2823_v56, 3  ;;  %v282_v13 = vsel %vm279_vm5, %v280_v1, %v281_v2  ;;  %v334_v14 = vsel %vm327_vm6, %v330_v3, %v333_v4 }
  0x14   :  { %622 = vmatpush.bf16.msra.mxu1 %v2572_v61  ;;  %v128_v15 = vor.u32 %v127_v6, %v124_v5  ;;  %v135_v16 = vor.u32 %v134_v8, %v131_v7  ;;  %v233_v17 = vor.u32 %v232_v10, %v231_v9  ;;  %v335_v23 = vrot.slane %v2813_v53, 3 }
  0x15   :  { %v236_v18 = vor.u32 %v235_v12, %v234_v11  ;;  %v336_v26 = vrot.slane %v2816_v54, 4  ;;  %v338_v27 = vrot.slane %v2819_v55, 3  ;;  %v339_v30 = vrot.slane %v2823_v56, 4 }
  0x16   :  { %519 = vmatpush.bf16.msra.mxu3 %v2567_v0  ;;  %v136_v19 = vsel %vm106_vm3, %v128_v15, %v135_v16  ;;  %v491_v36 = vrot.slane %v2755_v20, 5  ;;  %v492_v37 = vrot.slane %v2758_v21, 5  ;;  %v283_v38 = vrot.slane %v2755_v20, 3 }
  0x17   :  { %v237_v22 = vsel %vm223_vm4, %v233_v17, %v236_v18  ;;  %575 = vmatpush.bf16.msra.mxu0 %v2569_v31  ;;  %v284_v39 = vrot.slane %v2758_v21, 3  ;;  %679 = vmatpush.bf16.msra.mxu2 %v2573_v32  ;;  %v337_v41 = vor.u32 %v336_v26, %v335_v23  ;;  %v340_v42 = vor.u32 %v339_v30, %v338_v27 }
  0x18   :  { %623 = vmatpush.bf16.msra.mxu1 %v2571_v35  ;;  %v2877_v40 = vsel %vm487_vm7, %v491_v36, %v492_v37  ;;  %v432_v43 = vrot.slane %v2771_v28, 4  ;;  %v433_v44 = vrot.slane %v2774_v29, 5  ;;  %v435_v45 = vrot.slane %v2784_v33, 4 }
  0x19   :  { %v436_v46 = vrot.slane %v2787_v34, 5  ;;  %v285_v47 = vsel %vm279_vm5, %v283_v38, %v284_v39  ;;  %v341_v48 = vsel %vm327_vm6, %v337_v41, %v340_v42  ;;  %v384_v49 = vrot.slane %v2763_v24, 4 }
  0x1a   :  { %v385_v50 = vrot.slane %v2766_v25, 4  ;;  %v434_v51 = vor.u32 %v433_v44, %v432_v43  ;;  %v592_v57 = vrot.slane %v2763_v24, 6  ;;  %v593_v58 = vrot.slane %v2766_v25, 6 }
  0x1b   :  { %v437_v52 = vor.u32 %v436_v46, %v435_v45  ;;  %v640_v60 = vrot.slane %v2771_v28, 6  ;;  %v641_v61 = vrot.slane %v2774_v29, 7  ;;  %v643_v62 = vrot.slane %v2784_v33, 6 }
  0x1c   :  { %2165 = vmatmul.msk.bf16.vlgmr.msrb.gmra.mxu3 %vm160_vm2, %v282_v13  ;;  %2175 = vmatmul.msk.bf16.vlgmr.msrb.gmra.mxu0 %vm160_vm2, %v334_v14  ;;  %v594_v59 = vsel %vm591_vm8, %v592_v57, %v593_v58  ;;  %v386_v63 = vsel %vm96_vm0, %v384_v49, %v385_v50  ;;  %v644_v0 = vrot.slane %v2787_v34, 7  ;;  %v536_v4 = vrot.slane %v2771_v28, 5 }
  0x1d   :  { %v438_v1 = vsel %vm431_vm9, %v434_v51, %v437_v52  ;;  %v642_v2 = vor.u32 %v641_v61, %v640_v60  ;;  %v537_v5 = vrot.slane %v2774_v29, 6  ;;  %v539_v6 = vrot.slane %v2784_v33, 5  ;;  %v2582_v60 = vld [vmem:[%s3456_s3 + $0x38] sm:$0xff] }
  0x1e   :  { %v645_v3 = vor.u32 %v644_v0, %v643_v62  ;;  %v540_v7 = vrot.slane %v2787_v34, 6  ;;  %v595_v9 = vrot.slane %v2755_v20, 6  ;;  %v596_v10 = vrot.slane %v2758_v21, 6  ;;  %1483 = vmatpush.bf16.msrb.mxu3 %v2582_v60  ;;  %v2598_v0 = vld [vmem:[%s3456_s3 + $0xb8] sm:$0xff] }
  0x1f   :  { %v488_v11 = vrot.slane %v2763_v24, 5  ;;  %v489_v12 = vrot.slane %v2766_v25, 5  ;;  %v538_v13 = vor.u32 %v537_v5, %v536_v4  ;;  %v439_v33 = vrot.slane %v2813_v53, 4  ;;  %v2597_v5 = vld [vmem:[%s3456_s3 + $0xb0] sm:$0xff] }
  0x20   :  { %v646_v8 = vsel %vm639_vm10, %v642_v2, %v645_v3  ;;  %v597_v28 = vsel %vm591_vm8, %v595_v9, %v596_v10  ;;  %v541_v29 = vor.u32 %v540_v7, %v539_v6  ;;  %v440_v34 = vrot.slane %v2816_v54, 5  ;;  %v2606_v2 = vld [vmem:[%s3456_s3 + $0xf8] sm:$0xff]  ;;  %v2580_v6 = vld [vmem:[%s3456_s3 + $0x28] sm:$0xff] }
  0x21   :  { %2146 = vmatmul.msk.bf16.gmra.mxu1 %vm160_vm2, %v136_v19  ;;  %v442_v14 = vrot.slane %v2819_v55, 4  ;;  %v443_v15 = vrot.slane %v2823_v56, 5  ;;  %v490_v16 = vsel %vm487_vm7, %v488_v11, %v489_v12  ;;  %v387_v24 = vrot.slane %v2755_v20, 4  ;;  %v2590_v3 = vld [vmem:[%s3456_s3 + $0x78] sm:$0xff]  ;;  %v2589_v11 = vld [vmem:[%s3456_s3 + $0x70] sm:$0xff] }
  0x22   :  { %2156 = vmatmul.msk.bf16.gmra.mxu2 %vm160_vm2, %v237_v22  ;;  %v542_v17 = vsel %vm535_vm11, %v538_v13, %v541_v29  ;;  %v388_v25 = vrot.slane %v2758_v21, 4  ;;  %v441_v18 = vor.u32 %v440_v34, %v439_v33  ;;  %v647_v22 = vrot.slane %v2813_v53, 6  ;;  %1502 = vmatpush.bf16.msrb.mxu0 %v2590_v3  ;;  %v2579_v13 = vld [vmem:[%s3456_s3 + $0x20] sm:$0xff]  ;;  %v2604_v29 = vld [vmem:[%s3456_s3 + $0xe8] sm:$0xff]  ;;  %v2614_v3 = vld [vmem:[%s3456_s3 + $0x138] sm:$0xff] }
  0x23   :  { %v444_v19 = vor.u32 %v443_v15, %v442_v14  ;;  %v648_v23 = vrot.slane %v2816_v54, 7  ;;  %v650_v26 = vrot.slane %v2819_v55, 6  ;;  %v651_v27 = vrot.slane %v2823_v56, 7  ;;  %v2588_v34 = vld [vmem:[%s3456_s3 + $0x68] sm:$0xff]  ;;  %v2595_v14 = vld [vmem:[%s3456_s3 + $0xa0] sm:$0xff] }
  0x24   :  { %v389_v30 = vsel %vm96_vm0, %v387_v24, %v388_v25  ;;  %v543_v32 = vrot.slane %v2813_v53, 5  ;;  %v544_v35 = vrot.slane %v2816_v54, 6  ;;  %v546_v36 = vrot.slane %v2819_v55, 5  ;;  %v2603_v25 = vld [vmem:[%s3456_s3 + $0xe0] sm:$0xff]  ;;  %vm3348_vm0 = vmor %vm924_vm14, %vm1679_vm15 }
  0x25   :  { %v445_v20 = vsel %vm431_vm9, %v441_v18, %v444_v19  ;;  %v649_v31 = vor.u32 %v648_v23, %v647_v22  ;;  %v652_v21 = vor.u32 %v651_v27, %v650_v26  ;;  %v547_v37 = vrot.slane %v2823_v56, 6  ;;  %v2587_v19 = vld [vmem:[%s3456_s3 + $0x60] sm:$0xff]  ;;  %v2594_v22 = vld [vmem:[%s3456_s3 + $0x98] sm:$0xff]  ;;  %v2577_v27 = vld [vmem:[%s3456_s3 + $0x10] sm:$0xff] }
  0x26   :  { %v545_v39 = vor.u32 %v544_v35, %v543_v32  ;;  %1503 = vmatpush.bf16.msrb.mxu0 %v2589_v11  ;;  %v2586_v32 = vld [vmem:[%s3456_s3 + $0x58] sm:$0xff]  ;;  %v2593_v35 = vld [vmem:[%s3456_s3 + $0x90] sm:$0xff]  ;;  %vm1905_vm1 = vsmask.f32 7440  ;;  %vm1693_vm3 = vsmask.f32 256 }
  0x27   :  { %v653_v38 = vsel %vm639_vm10, %v649_v31, %v652_v21  ;;  %v548_v41 = vor.u32 %v547_v37, %v546_v36  ;;  %vm1765_vm5 = vcmask 523264  }
  0x29   :  { %v549_v42 = vsel %vm535_vm11, %v545_v39, %v548_v41  ;;  %v2601_v41 = vld [vmem:[%s3456_s3 + $0xd0] sm:$0xff]  ;;  %vm2121_vm11 = vcmask 1024  }
  0x2a   :  { %1504 = vmatpush.bf16.msrb.mxu0 %v2588_v34 }
  0x2c   :  { %2166 = vmatmul.msk.bf16.gmra.mxu3 %vm160_vm2, %v285_v47  ;;  %2176 = vmatmul.msk.bf16.gmra.mxu0 %vm160_vm2, %v341_v48 }
  0x2e   :  { %1505 = vmatpush.bf16.msrb.mxu0 %v2587_v19 }
  0x31   :  { %2185 = vmatmul.msk.bf16.vlgmr.msrb.gmra.mxu1 %vm160_vm2, %v386_v63 }
  0x32   :  { %2195 = vmatmul.msk.bf16.vlgmr.msrb.gmra.mxu2 %vm160_vm2, %v438_v1  ;;  %v2581_v1 = vld [vmem:[%s3456_s3 + $0x30] sm:$0xff]  ;;  %1521 = vmatpush.bf16.msrb.mxu1 %v2598_v0 }
  0x33   :  { %1484 = vmatpush.bf16.msrb.mxu3 %v2581_v1  ;;  %1540 = vmatpush.bf16.msrb.mxu2 %v2606_v2 }
  0x34   :  { %1506 = vmatpush.bf16.msrb.mxu0 %v2586_v32  ;;  %v2612_v32 = vld [vmem:[%s3456_s3 + $0x128] sm:$0xff] }
  0x36   :  { %1522 = vmatpush.bf16.msrb.mxu1 %v2597_v5 }
  0x37   :  { %1485 = vmatpush.bf16.msrb.mxu3 %v2580_v6 }
  0x3b   :  { %1486 = vmatpush.bf16.msrb.mxu3 %v2579_v13 }
  0x3c   :  { %2205 = vmatmul.msk.bf16.vlgmr.msra.gmra.mxu3 %vm160_vm2, %v490_v16  ;;  %2215 = vmatmul.msk.bf16.vlgmr.msra.gmra.mxu0 %vm160_vm2, %v542_v17  ;;  %v2578_v16 = vld [vmem:[%s3456_s3 + $0x18] sm:$0xff] }
  0x3f   :  { %1487 = vmatpush.bf16.msrb.mxu3 %v2578_v16 }
  0x41   :  { %2186 = vmatmul.msk.bf16.gmra.mxu1 %vm160_vm2, %v389_v30 }
  0x42   :  { %2196 = vmatmul.msk.bf16.gmra.mxu2 %vm160_vm2, %v445_v20  ;;  %v2602_v20 = vld [vmem:[%s3456_s3 + $0xd8] sm:$0xff] }
  0x43   :  { %1488 = vmatpush.bf16.msrb.mxu3 %v2577_v27 }
  0x4c   :  { %2206 = vmatmul.msk.bf16.gmra.mxu3 %vm160_vm2, %v2877_v40  ;;  %2216 = vmatmul.msk.bf16.gmra.mxu0 %vm160_vm2, %v549_v42 }
  0x51   :  { %2225 = vmatmul.msk.bf16.vlgmr.msra.gmra.mxu1 %vm160_vm2, %v594_v59 }
  0x52   :  { %2235 = vmatmul.msk.bf16.vlgmr.msra.gmra.mxu2 %vm160_vm2, %v646_v8  ;;  %v2605_v8 = vld [vmem:[%s3456_s3 + $0xf0] sm:$0xff] }
  0x53   :  { %1541 = vmatpush.bf16.msrb.mxu2 %v2605_v8 }
  0x57   :  { %1542 = vmatpush.bf16.msrb.mxu2 %v2604_v29  ;;  %v2630_v29 = vld [vmem:[%s3456_s3 + $0x1b8] sm:$0xff] }
  0x5b   :  { %1543 = vmatpush.bf16.msrb.mxu2 %v2603_v25 }
  0x5f   :  { %1544 = vmatpush.bf16.msrb.mxu2 %v2602_v20 }
  0x61   :  { %2226 = vmatmul.msk.bf16.gmra.mxu1 %vm160_vm2, %v597_v28  ;;  %v2596_v28 = vld [vmem:[%s3456_s3 + $0xa8] sm:$0xff] }
  0x62   :  { %2236 = vmatmul.msk.bf16.gmra.mxu2 %vm160_vm2, %v653_v38  ;;  %1523 = vmatpush.bf16.msrb.mxu1 %v2596_v28  ;;  %v2576_v38 = vld [vmem:[%s3456_s3 + $0x8] sm:$0xff] }
  0x63   :  { %1489 = vmatpush.bf16.msrb.mxu3 %v2576_v38  ;;  %1545 = vmatpush.bf16.msrb.mxu2 %v2601_v41 }
  0x66   :  { %1524 = vmatpush.bf16.msrb.mxu1 %v2595_v14 }
  0x6a   :  { %1525 = vmatpush.bf16.msrb.mxu1 %v2594_v22 }
  0x6e   :  { %1526 = vmatpush.bf16.msrb.mxu1 %v2593_v35  ;;  %v2629_v35 = vld [vmem:[%s3456_s3 + $0x1b0] sm:$0xff] }
  0x89   :  { %v176_v55 = vpop.f32.mrf.mxu0 }
  0x8e   :  { %v213_v53 = vpop.f32.mrf.mxu1 }
  0x8f   :  { %v2941_v54 = vpop.f32.mrf.mxu3  ;;  %v214_v9 = vadd.f32 %v213_v53, %v176_v55  ;;  %v2585_v55 = vld [vmem:[%s3456_s3 + $0x50] sm:$0xff] }
  0x90   :  { %1507 = vmatpush.bf16.msrb.mxu0 %v2585_v55 }
  0x91   :  { %v178_v45 = vpop.f32.mrf.mxu0 }
  0x95   :  { %v265_v56 = vpop.f32.mrf.mxu2 }
  0x96   :  { %v215_v43 = vpop.f32.mrf.mxu1  ;;  %v275_v33 = vadd.f32 %v265_v56, %v214_v9  ;;  %v2583_v9 = vld [vmem:[%s3456_s3 + $0x40] sm:$0xff] }
  0x97   :  { %v2943_v44 = vpop.f32.mrf.mxu3  ;;  %v216_v23 = vadd.f32 %v215_v43, %v178_v45  ;;  %v2592_v43 = vld [vmem:[%s3456_s3 + $0x88] sm:$0xff] }
  0x98   :  { %1527 = vmatpush.bf16.msrb.mxu1 %v2592_v43 }
  0x99   :  { %v369_v48 = vpop.f32.mrf.mxu0 }
  0x9d   :  { %v2945_v40 = vpop.f32.mrf.mxu2 }
  0x9e   :  { %v2947_v46 = vpop.f32.mrf.mxu1  ;;  %v276_v31 = vadd.f32 %v2945_v40, %v216_v23 }
  0x9f   :  { %v313_v47 = vpop.f32.mrf.mxu3  ;;  %v219_v45 = vadd.f32 %v2947_v46, %v2941_v54 }
  0xa0   :  { %v323_v15 = vadd.f32 %v313_v47, %v275_v33  ;;  %v2575_v47 = vld [vmem:[%s3456_s3] sm:$0xff] }
  0xa1   :  { %v2955_v52 = vpop.f32.mrf.mxu0  ;;  %1490 = vmatpush.bf16.msrb.mxu3 %v2575_v47  ;;  %v2620_v47 = vld [vmem:[%s3456_s3 + $0x168] sm:$0xff] }
  0xa2   :  { %v379_v26 = vadd.f32 %v369_v48, %v323_v15  ;;  %v83_v48 = vld [vmem:[%s3457_s2] sm:$0x7] }
  0xa3   :  { %v3078_v2 = vperm.slane %v83_v48, 0  ;;  %v3096_v13 = vperm.slane %v83_v48, 1  ;;  %v3106_v15 = vperm.slane %v83_v48, 2 }
  0xa5   :  { %v2949_v49 = vpop.f32.mrf.mxu2  ;;  %1559 = vmatpush.bf16.msra.mxu3 %v2614_v3 }
  0xa6   :  { %v2951_v50 = vpop.f32.mrf.mxu1 }
  0xa7   :  { %v2953_v51 = vpop.f32.mrf.mxu3 }
  0xa8   :  { %v324_v36 = vadd.f32 %v2953_v51, %v276_v31  ;;  %v2600_v51 = vld [vmem:[%s3456_s3 + $0xc8] sm:$0xff] }
  0xa9   :  { %v2964_v61 = vpop.f32.mrf.mxu0  ;;  %1546 = vmatpush.bf16.msrb.mxu2 %v2600_v51 }
  0xaa   :  { %v380_v40 = vadd.f32 %v2955_v52, %v324_v36  ;;  %v2584_v52 = vld [vmem:[%s3456_s3 + $0x48] sm:$0xff] }
  0xab   :  { %1508 = vmatpush.bf16.msrb.mxu0 %v2584_v52 }
  0xad   :  { %v2957_v57 = vpop.f32.mrf.mxu2 }
  0xae   :  { %v417_v58 = vpop.f32.mrf.mxu1 }
  0xaf   :  { %v2959_v59 = vpop.f32.mrf.mxu3  ;;  %v427_v21 = vadd.f32 %v417_v58, %v379_v26  ;;  %v277_v58 = vadd.f32 %v2949_v49, %v219_v45  ;;  %v2591_v49 = vld [vmem:[%s3456_s3 + $0x80] sm:$0xff]  ;;  %1509 = vmatpush.bf16.msrb.mxu0 %v2583_v9 }
  0xb0   :  { %1528 = vmatpush.bf16.msrb.mxu1 %v2591_v49 }
  0xb1   :  { %v2998_v12 = vpop.f32.mrf.mxu0 }
  0xb4   :  { %1597 = vmatpush.bf16.msra.mxu1 %v2630_v29 }
  0xb5   :  { %v473_v62 = vpop.f32.mrf.mxu2 }
  0xb6   :  { %v2966_v63 = vpop.f32.mrf.mxu1  ;;  %v483_v37 = vadd.f32 %v473_v62, %v427_v21  ;;  %v325_v62 = vadd.f32 %v2959_v59, %v277_v58  ;;  %v2599_v59 = vld [vmem:[%s3456_s3 + $0xc0] sm:$0xff] }
  0xb7   :  { %v2980_v4 = vpop.f32.mrf.mxu3  ;;  %v428_v54 = vadd.f32 %v2966_v63, %v380_v40  ;;  %1547 = vmatpush.bf16.msrb.mxu2 %v2599_v59  ;;  %v2626_v59 = vld [vmem:[%s3456_s3 + $0x198] sm:$0xff] }
  0xb8   :  { %v381_v11 = vadd.f32 %v2964_v61, %v325_v62  ;;  %1598 = vmatpush.bf16.msra.mxu1 %v2629_v35 }
  0xb9   :  { %v577_v30 = vpop.f32.mrf.mxu0 }
  0xbd   :  { %v2988_v7 = vpop.f32.mrf.mxu2 }
  0xbe   :  { %v2993_v10 = vpop.f32.mrf.mxu1  ;;  %v484_v0 = vadd.f32 %v2988_v7, %v428_v54  ;;  %v221_v7 = vadd.f32 %v2951_v50, %v2943_v44  ;;  %v2613_v44 = vld [vmem:[%s3456_s3 + $0x130] sm:$0xff]  ;;  %v2627_v54 = vld [vmem:[%s3456_s3 + $0x1a0] sm:$0xff] }
  0xbf   :  { %v521_v17 = vpop.f32.mrf.mxu3  ;;  %v429_v50 = vadd.f32 %v2993_v10, %v381_v11  ;;  %1560 = vmatpush.bf16.msra.mxu3 %v2613_v44 }
  0xc0   :  { %v531_v42 = vadd.f32 %v521_v17, %v483_v37  ;;  %v278_v33 = vadd.f32 %v2957_v57, %v221_v7 }
  0xc1   :  { %v579_v60 = vpop.f32.mrf.mxu0 }
  0xc2   :  { %v587_v46 = vadd.f32 %v577_v30, %v531_v42  ;;  %v326_v16 = vadd.f32 %v2980_v4, %v278_v33  ;;  %v2622_v30 = vld [vmem:[%s3456_s3 + $0x178] sm:$0xff]  ;;  %v2666_v4 = vmov 0.0|0.0   ;;  %v2611_v42 = vld [vmem:[%s3456_s3 + $0x120] sm:$0xff] }
  0xc3   :  { %1578 = vmatpush.bf16.msra.mxu0 %v2622_v30  ;;  %1561 = vmatpush.bf16.msra.mxu3 %v2612_v32 }
  0xc4   :  { %v382_v20 = vadd.f32 %v2998_v12, %v326_v16  ;;  %v2621_v12 = vld [vmem:[%s3456_s3 + $0x170] sm:$0xff] }
  0xc5   :  { %v3018_v24 = vpop.f32.mrf.mxu2 }
  0xc6   :  { %v3023_v18 = vpop.f32.mrf.mxu1  ;;  %v485_v17 = vadd.f32 %v3018_v24, %v429_v50  ;;  %v3117_v24 = vunpack.c.l.b16 %v2666_v4 }
  0xc7   :  { %v523_v56 = vpop.f32.mrf.mxu3  ;;  %v430_v36 = vadd.f32 %v3023_v18, %v382_v20  ;;  %1579 = vmatpush.bf16.msra.mxu0 %v2621_v12  ;;  %1562 = vmatpush.bf16.msra.mxu3 %v2611_v42  ;;  %v2618_v20 = vld [vmem:[%s3456_s3 + $0x158] sm:$0xff]  ;;  %v2617_v42 = vld [vmem:[%s3456_s3 + $0x150] sm:$0xff] }
  0xc8   :  { %v532_v5 = vadd.f32 %v523_v56, %v484_v0  ;;  %v3161_v7 = vpack.c.b16 %v3117_v24, %v3117_v24 }
  0xc9   :  { %v582_v19 = vpop.f32.mrf.mxu0 }
  0xca   :  { %v588_v61 = vadd.f32 %v579_v60, %v532_v5 }
  0xcb   :  { %1580 = vmatpush.bf16.msra.mxu0 %v2620_v47 }
  0xcd   :  { %v3048_v39 = vpop.f32.mrf.mxu2 }
  0xce   :  { %v625_v53 = vpop.f32.mrf.mxu1  ;;  %v486_v56 = vadd.f32 %v3048_v39, %v430_v36  ;;  %v2610_v39 = vld [vmem:[%s3456_s3 + $0x118] sm:$0xff] }
  0xcf   :  { %v635_v1 = vadd.f32 %v625_v53, %v587_v46  ;;  %v526_v34 = vpop.f32.mrf.mxu3  ;;  %v2628_v53 = vld [vmem:[%s3456_s3 + $0x1a8] sm:$0xff]  ;;  %1563 = vmatpush.bf16.msra.mxu3 %v2610_v39 }
  0xd0   :  { %v533_v23 = vadd.f32 %v526_v34, %v485_v17  ;;  %1599 = vmatpush.bf16.msra.mxu1 %v2628_v53 }
  0xd1   :  { %v584_v46 = vpop.f32.mrf.mxu0 }
  0xd2   :  { %v589_v37 = vadd.f32 %v582_v19, %v533_v23 }
  0xd4   :  { %1600 = vmatpush.bf16.msra.mxu1 %v2627_v54 }
  0xd5   :  { %v681_v63 = vpop.f32.mrf.mxu2 }
  0xd6   :  { %v691_v6 = vadd.f32 %v681_v63, %v635_v1  ;;  %v627_v8 = vpop.f32.mrf.mxu1  ;;  %v2619_v63 = vld [vmem:[%s3456_s3 + $0x160] sm:$0xff] }
  0xd7   :  { %v636_v25 = vadd.f32 %v627_v8, %v588_v61  ;;  %v528_v55 = vpop.f32.mrf.mxu3  ;;  %v2609_v8 = vld [vmem:[%s3456_s3 + $0x110] sm:$0xff]  ;;  %1581 = vmatpush.bf16.msra.mxu0 %v2619_v63 }
  0xd8   :  { %v696_v28 = vadd.f32 %v3078_v2, %v691_v6  ;;  %v534_v48 = vadd.f32 %v528_v55, %v486_v56  ;;  %1564 = vmatpush.bf16.msra.mxu3 %v2609_v8  ;;  %1601 = vmatpush.bf16.msra.mxu1 %v2626_v59 }
  0xda   :  { %v700_v14 = vmax.f32 %v696_v28, 0.0  ;;  %v590_v3 = vadd.f32 %v584_v46, %v534_v48 }
  0xdb   :  { %1582 = vmatpush.bf16.msra.mxu0 %v2618_v20 }
  0xdc   :  { %v705_v57 = vmul.f32 %v3096_v13, %v700_v14 }
  0xdd   :  { %v683_v22 = vpop.f32.mrf.mxu2 }
  0xde   :  { %v710_v26 = vadd.f32 %v3106_v15, %v705_v57  ;;  %v692_v27 = vadd.f32 %v683_v22, %v636_v25  ;;  %v630_v10 = vpop.f32.mrf.mxu1 }
  0xdf   :  { %v637_v45 = vadd.f32 %v630_v10, %v589_v37  ;;  %1583 = vmatpush.bf16.msra.mxu0 %v2617_v42 }
  0xe0   :  { %v828_v31 = vpack.c.bf16 %v710_v26, %v710_v26  ;;  %v697_v21 = vadd.f32 %v3078_v2, %v692_v27 }
  0xe2   :  { %v838_v38 = vunpack.c.l.b16 %v828_v31  ;;  %v701_v41 = vmax.f32 %v697_v21, 0.0  ;;  %v2608_v31 = vld [vmem:[%s3456_s3 + $0x108] sm:$0xff]  ;;  %v2625_v21 = vld [vmem:[%s3456_s3 + $0x190] sm:$0xff] }
  0xe3   :  { %1565 = vmatpush.bf16.msra.mxu3 %v2608_v31  ;;  %1602 = vmatpush.bf16.msra.mxu1 %v2625_v21 }
  0xe4   :  { %v842_v43 = vpack.c.b16 %v838_v38, %v3117_v24  ;;  %v706_v18 = vmul.f32 %v3096_v13, %v701_v41 }
  0xe5   :  { %v686_v40 = vpop.f32.mrf.mxu2 }
  0xe6   :  { %v711_v51 = vadd.f32 %v3106_v15, %v706_v18  ;;  %v693_v58 = vadd.f32 %v686_v40, %v637_v45  ;;  %v848_v52 = vshrl.u32 %v842_v43, 16  ;;  %v850_v60 = vshll.u32 %v842_v43, 16  ;;  %v632_v1 = vpop.f32.mrf.mxu1  ;;  %v2607_v18 = vld [vmem:[%s3456_s3 + $0x100] sm:$0xff]  ;;  %v2624_v45 = vld [vmem:[%s3456_s3 + $0x188] sm:$0xff] }
  0xe7   :  { %v638_v34 = vadd.f32 %v632_v1, %v590_v3  ;;  %v878_v44 = vrot.slane %v842_v43, 1  ;;  %1566 = vmatpush.bf16.msra.mxu3 %v2607_v18  ;;  %1603 = vmatpush.bf16.msra.mxu1 %v2624_v45 }
  0xe8   :  { %v829_v62 = vpack.c.bf16 %v711_v51, %v711_v51  ;;  %v698_v0 = vadd.f32 %v3078_v2, %v693_v58  ;;  %v852_v49 = vrot.slane %v850_v60, 1  ;;  %v930_v9 = vrot.slane %v848_v52, 2 }
  0xe9   :  { %v931_v11 = vrot.slane %v850_v60, 3 }
  0xea   :  { %v839_v5 = vunpack.c.l.b16 %v829_v62  ;;  %v702_v6 = vmax.f32 %v698_v0, 0.0  ;;  %v853_v61 = vor.u32 %v852_v49, %v848_v52 }
  0xeb   :  { %v932_v19 = vor.u32 %v931_v11, %v930_v9 }
  0xec   :  { %v843_v28 = vpack.c.b16 %v839_v5, %v839_v5  ;;  %v3163_v29 = vpack.c.b16 %v839_v5, %v838_v38  ;;  %v707_v33 = vmul.f32 %v3096_v13, %v702_v6 }
  0xed   :  { %v688_v50 = vpop.f32.mrf.mxu2 }
  0xee   :  { %v879_v14 = vrot.slane %v843_v28, 1  ;;  %v712_v16 = vadd.f32 %v3106_v15, %v707_v33  ;;  %v694_v17 = vadd.f32 %v688_v50, %v638_v34  ;;  %v855_v57 = vshll.u32 %v843_v28, 16 }
  0xef   :  { %v859_v25 = vshrl.u32 %v843_v28, 16  ;;  %v887_v22 = vshrl.u32 %v3163_v29, 16  ;;  %v890_v23 = vshll.u32 %v3163_v29, 16  ;;  %v904_v50 = vrot.slane %v3161_v7, 6 }
  0xf0   :  { %v830_v26 = vpack.c.bf16 %v712_v16, %v712_v16  ;;  %v699_v27 = vadd.f32 %v3078_v2, %v694_v17  ;;  %v857_v10 = vrot.slane %v855_v57, 1  ;;  %v934_v30 = vrot.slane %v855_v57, 3 }
  0xf1   :  { %v933_v32 = vrot.slane %v859_v25, 2  ;;  %v880_v35 = vsel %vm877_vm12, %v878_v44, %v879_v14  ;;  %v963_v12 = vshrl.u32 %v879_v14, 16  ;;  %v966_v36 = vshll.u32 %v879_v14, 16 }
  0xf2   :  { %v840_v2 = vunpack.c.l.b16 %v830_v26  ;;  %v703_v37 = vmax.f32 %v699_v27, 0.0  ;;  %v955_v38 = vshrl.u32 %v880_v35, 16  ;;  %v958_v41 = vshll.u32 %v880_v35, 16 }
  0xf3   :  { %v935_v53 = vor.u32 %v934_v30, %v933_v32  ;;  %v965_v55 = vrot.slane %v963_v12, 2  ;;  %v968_v56 = vrot.slane %v966_v36, 3  ;;  %v889_v43 = vrot.slane %v887_v22, 5 }
  0xf4   :  { %v3192_v40 = vpack.c.b16 %v840_v2, %v3117_v24  ;;  %v708_v47 = vmul.f32 %v3096_v13, %v703_v37  ;;  %v957_v48 = vrot.slane %v955_v38, 2  ;;  %v960_v51 = vrot.slane %v958_v41, 3  ;;  %v2616_v13 = vld [vmem:[%s3456_s3 + $0x148] sm:$0xff] }
  0xf5   :  { %v936_v58 = vsel %vm223_vm4, %v932_v19, %v935_v53  ;;  %v969_v39 = vor.u32 %v968_v56, %v965_v55  ;;  %v892_v54 = vrot.slane %v890_v23, 6  ;;  %v858_v46 = vsel %vm846_vm13, %v853_v61, %v857_v10  ;;  %1584 = vmatpush.bf16.msra.mxu0 %v2616_v13  ;;  %v2615_v61 = vld [vmem:[%s3456_s3 + $0x140] sm:$0xff] }
  0xf6   :  { %v713_v52 = vadd.f32 %v3106_v15, %v708_v47  ;;  %1491 = vmatmul.bf16.vlgmr.msrb.gmra.mxu3 %v936_v58  ;;  %v961_v60 = vor.u32 %v960_v51, %v957_v48  ;;  %v861_v62 = vor.u32 %v859_v25, %v857_v10  ;;  %v938_v0 = vshrl.u32 %v858_v46, 16  ;;  %v2623_v15 = vld [vmem:[%s3456_s3 + $0x180] sm:$0xff] }
  0xf7   :  { %v893_v24 = vor.u32 %v892_v54, %v889_v43  ;;  %v941_v1 = vshll.u32 %v858_v46, 16  ;;  %v863_v49 = vshrl.u32 %v3192_v40, 16  ;;  %v865_v63 = vshll.u32 %v3192_v40, 16  ;;  %1604 = vmatpush.bf16.msra.mxu1 %v2623_v15 }
  0xf8   :  { %v831_v3 = vpack.c.bf16 %v713_v52, %v713_v52  ;;  %v970_v5 = vsel %vm223_vm4, %v961_v60, %v969_v39  ;;  %v940_v6 = vrot.slane %v938_v0, 2  ;;  %v946_v8 = vshrl.u32 %v861_v62, 16 }
  0xf9   :  { %1529 = vmatmul.bf16.vlgmr.msrb.gmra.mxu1 %v970_v5  ;;  %v972_v59 = vshrl.u32 %v893_v24, 16  ;;  %v975_v9 = vshll.u32 %v893_v24, 16  ;;  %v943_v11 = vrot.slane %v941_v1, 3  ;;  %v949_v28 = vshll.u32 %v861_v62, 16  ;;  %1585 = vmatpush.bf16.msra.mxu0 %v2615_v61 }
  0xfa   :  { %v841_v33 = vunpack.c.l.b16 %v831_v3  ;;  %v948_v34 = vrot.slane %v946_v8, 2  ;;  %v867_v44 = vrot.slane %v865_v63, 1  ;;  %v3216_v26 = vrot.slane %v3163_v29, 6 }
  0xfb   :  { %v974_v14 = vrot.slane %v972_v59, 2  ;;  %v977_v16 = vrot.slane %v975_v9, 3  ;;  %v944_v17 = vor.u32 %v943_v11, %v940_v6  ;;  %v951_v57 = vrot.slane %v949_v28, 3 }
  0xfc   :  { %v845_v25 = vpack.c.b16 %v841_v33, %v841_v33  ;;  %v3213_v19 = vpack.c.b16 %v841_v33, %v840_v2  ;;  %v926_v27 = vrot.slane %v3161_v7, 7  ;;  %v1031_v20 = vrot.slane %v863_v49, 2 }
  0xfd   :  { %v978_v10 = vor.u32 %v977_v16, %v974_v14  ;;  %v952_v30 = vor.u32 %v951_v57, %v948_v34  ;;  %v1032_v31 = vrot.slane %v865_v63, 3  ;;  %v881_v35 = vrot.slane %v3192_v40, 1 }
  0xfe   :  { %v870_v21 = vshll.u32 %v845_v25, 16  ;;  %v874_v32 = vshrl.u32 %v845_v25, 16  ;;  %v882_v12 = vrot.slane %v845_v25, 1  ;;  %v868_v2 = vor.u32 %v867_v44, %v863_v49 }
  0xff   :  { %1548 = vmatmul.bf16.vlgmr.msrb.gmra.mxu2 %v978_v10  ;;  %v953_v36 = vsel %vm223_vm4, %v944_v17, %v952_v30  ;;  %v895_v37 = vshrl.u32 %v3213_v19, 16  ;;  %v898_v38 = vshll.u32 %v3213_v19, 16  ;;  %v1033_v40 = vor.u32 %v1032_v31, %v1031_v20 }
 0x100   :  { %1510 = vmatmul.bf16.vlgmr.msrb.gmra.mxu0 %v953_v36  ;;  %v872_v41 = vrot.slane %v870_v21, 1  ;;  %v1034_v42 = vrot.slane %v874_v32, 2  ;;  %v1035_v53 = vrot.slane %v870_v21, 3  ;;  %v883_v55 = vsel %vm877_vm12, %v881_v35, %v882_v12 }
 0x101   :  { %v1056_v56 = vshrl.u32 %v883_v55, 16  ;;  %v1059_v43 = vshll.u32 %v883_v55, 16  ;;  %v1064_v18 = vshrl.u32 %v882_v12, 16  ;;  %v1067_v45 = vshll.u32 %v882_v12, 16 }
 0x102   :  { %v1036_v47 = vor.u32 %v1035_v53, %v1034_v42  ;;  %v897_v48 = vrot.slane %v895_v37, 5  ;;  %v900_v51 = vrot.slane %v898_v38, 6  ;;  %v873_v62 = vsel %vm846_vm13, %v868_v2, %v872_v41 }
 0x103   :  { %v1058_v58 = vrot.slane %v1056_v56, 2  ;;  %v1061_v39 = vrot.slane %v1059_v43, 3  ;;  %v1066_v54 = vrot.slane %v1064_v18, 2  ;;  %v1069_v46 = vrot.slane %v1067_v45, 3 }
 0x104   :  { %v1037_v52 = vsel %vm223_vm4, %v1033_v40, %v1036_v47  ;;  %v901_v60 = vor.u32 %v900_v51, %v897_v48  ;;  %v905_v0 = vsel %vm591_vm8, %v3216_v26, %v904_v50  ;;  %v876_v1 = vor.u32 %v874_v32, %v872_v41 }
 0x105   :  { %v1062_v13 = vor.u32 %v1061_v39, %v1058_v58  ;;  %v1070_v24 = vor.u32 %v1069_v46, %v1066_v54  ;;  %v1039_v49 = vshrl.u32 %v873_v62, 16  ;;  %v1042_v3 = vshll.u32 %v873_v62, 16 }
 0x106   :  { %1496 = vmatmul.bf16.gmra.mxu3 %v1037_v52  ;;  %v1073_v63 = vshrl.u32 %v901_v60, 16  ;;  %v1076_v15 = vshll.u32 %v901_v60, 16  ;;  %v981_v5 = vshrl.u32 %v3216_v26, 16  ;;  %v1047_v59 = vshrl.u32 %v876_v1, 16 }
 0x107   :  { %v1071_v6 = vsel %vm223_vm4, %v1062_v13, %v1070_v24  ;;  %v1041_v8 = vrot.slane %v1039_v49, 2  ;;  %v1050_v9 = vshll.u32 %v876_v1, 16  ;;  %v1044_v33 = vrot.slane %v1042_v3, 3 }
 0x108   :  { %v1075_v11 = vrot.slane %v1073_v63, 2  ;;  %v1078_v28 = vrot.slane %v1076_v15, 3  ;;  %v984_v34 = vshll.u32 %v3216_v26, 16  ;;  %v1049_v44 = vrot.slane %v1047_v59, 2 }
 0x109   :  { %1534 = vmatmul.bf16.gmra.mxu1 %v1071_v6  ;;  %v1052_v61 = vrot.slane %v1050_v9, 3  ;;  %v989_v14 = vshrl.u32 %v905_v0, 16  ;;  %v992_v16 = vshll.u32 %v905_v0, 16  ;;  %v1045_v17 = vor.u32 %v1044_v33, %v1041_v8 }
 0x10a   :  { %v925_v57 = vrot.slane %v3163_v29, 7  ;;  %v912_v25 = vshrl.u32 %v3161_v7, 16  ;;  %v915_v10 = vshll.u32 %v3161_v7, 16  ;;  %v1079_v30 = vor.u32 %v1078_v28, %v1075_v11 }
 0x10b   :  { %v1053_v20 = vor.u32 %v1052_v61, %v1049_v44  ;;  %v983_v31 = vrot.slane %v981_v5, 2  ;;  %v986_v21 = vrot.slane %v984_v34, 3  ;;  %v991_v32 = vrot.slane %v989_v14, 2 }
 0x10c   :  { %v927_v26 = vsel %vm924_vm14, %v925_v57, %v926_v27  ;;  %v1015_v35 = vshrl.u32 %v925_v57, 16  ;;  %v1018_v12 = vshll.u32 %v925_v57, 16  ;;  %v994_v2 = vrot.slane %v992_v16, 3 }
 0x10d   :  { %v1054_v36 = vsel %vm223_vm4, %v1045_v17, %v1053_v20  ;;  %v1023_v41 = vshrl.u32 %v927_v26, 16  ;;  %v1026_v42 = vshll.u32 %v927_v26, 16  ;;  %v908_v53 = vrot.slane %v887_v22, 6 }
 0x10e   :  { %v909_v55 = vrot.slane %v890_v23, 7  ;;  %v1017_v56 = vrot.slane %v1015_v35, 2  ;;  %v1020_v43 = vrot.slane %v1018_v12, 3  ;;  %v914_v18 = vrot.slane %v912_v25, 6 }
 0x10f   :  { %1553 = vmatmul.bf16.gmra.mxu2 %v1079_v30  ;;  %v1025_v45 = vrot.slane %v1023_v41, 2  ;;  %v1028_v40 = vrot.slane %v1026_v42, 3  ;;  %v917_v48 = vrot.slane %v915_v10, 7  ;;  %v987_v51 = vor.u32 %v986_v21, %v983_v31 }
 0x110   :  { %1515 = vmatmul.bf16.gmra.mxu0 %v1054_v36  ;;  %v910_v47 = vor.u32 %v909_v55, %v908_v53  ;;  %v995_v58 = vor.u32 %v994_v2, %v991_v32  ;;  %v906_v54 = vrot.slane %v3213_v19, 6  ;;  %v1021_v22 = vor.u32 %v1020_v43, %v1017_v56 }
 0x111   :  { %v918_v39 = vor.u32 %v917_v48, %v914_v18  ;;  %v1029_v60 = vor.u32 %v1028_v40, %v1025_v45  ;;  %v928_v13 = vrot.slane %v3213_v19, 7  ;;  %v920_v3 = vrot.slane %v895_v37, 6 }
 0x112   :  { %v998_v46 = vshrl.u32 %v910_v47, 16  ;;  %v1001_v52 = vshll.u32 %v910_v47, 16  ;;  %v996_v23 = vsel %vm223_vm4, %v987_v51, %v995_v58  ;;  %v907_v24 = vsel %vm591_vm8, %v906_v54, %v904_v50  ;;  %vm3388_vm8 = vmor %vm431_vm9, %vm1905_vm1 }
 0x113   :  { %v919_v29 = vsel %vm639_vm10, %v910_v47, %v918_v39  ;;  %v921_v5 = vrot.slane %v898_v38, 7  ;;  %v1030_v6 = vsel %vm223_vm4, %v1021_v22, %v1029_v60  ;;  %v1082_v8 = vshrl.u32 %v906_v54, 16  ;;  %v2638_v60 = vld [vmem:[%s3459_s5 + $0x38] sm:$0xff] }
 0x114   :  { %v1006_v62 = vshrl.u32 %v919_v29, 16  ;;  %v1009_v0 = vshll.u32 %v919_v29, 16  ;;  %v1000_v1 = vrot.slane %v998_v46, 2  ;;  %v1003_v49 = vrot.slane %v1001_v52, 3  ;;  %1776 = vmatpush.bf16.msra.mxu2 %v2638_v60 }
 0x115   :  { %v1085_v59 = vshll.u32 %v906_v54, 16  ;;  %v1090_v9 = vshrl.u32 %v907_v24, 16  ;;  %v1093_v11 = vshll.u32 %v907_v24, 16  ;;  %v929_v50 = vsel %vm924_vm14, %v928_v13, %v926_v27 }
 0x116   :  { %1567 = vmatmul.bf16.vlgmr.msra.gmra.mxu3 %v996_v23  ;;  %v1008_v63 = vrot.slane %v1006_v62, 2  ;;  %v1011_v15 = vrot.slane %v1009_v0, 3  ;;  %v1004_v28 = vor.u32 %v1003_v49, %v1000_v1  ;;  %v1116_v34 = vshrl.u32 %v928_v13, 16  ;;  %v2637_v1 = vld [vmem:[%s3459_s5 + $0x30] sm:$0xff]  ;;  %v2642_v49 = vld [vmem:[%s3459_s5 + $0x58] sm:$0xff] }
 0x117   :  { %v1119_v44 = vshll.u32 %v928_v13, 16  ;;  %v1124_v61 = vshrl.u32 %v929_v50, 16  ;;  %v1127_v37 = vshll.u32 %v929_v50, 16  ;;  %v922_v14 = vor.u32 %v921_v5, %v920_v3  ;;  %1886 = vmatpush.bf16.msrb.mxu0 %v2642_v49  ;;  %v2633_v50 = vld [vmem:[%s3459_s5 + $0x10] sm:$0xff] }
 0x118   :  { %v1012_v33 = vor.u32 %v1011_v15, %v1008_v63  ;;  %v1084_v19 = vrot.slane %v1082_v8, 2  ;;  %v1087_v38 = vrot.slane %v1085_v59, 3  ;;  %v1092_v16 = vrot.slane %v1090_v9, 2  ;;  %v2634_v63 = vld [vmem:[%s3459_s5 + $0x18] sm:$0xff]  ;;  %1777 = vmatpush.bf16.msra.mxu2 %v2637_v1  ;;  %v2641_v9 = vld [vmem:[%s3459_s5 + $0x50] sm:$0xff] }
 0x119   :  { %1605 = vmatmul.bf16.vlgmr.msra.gmra.mxu1 %v1030_v6  ;;  %v1095_v17 = vrot.slane %v1093_v11, 3  ;;  %v1118_v25 = vrot.slane %v1116_v34, 2  ;;  %v1121_v10 = vrot.slane %v1119_v44, 3  ;;  %v1126_v30 = vrot.slane %v1124_v61, 2  ;;  %1831 = vmatpush.bf16.msrb.mxu3 %v2634_v63  ;;  %v2636_v11 = vld [vmem:[%s3459_s5 + $0x28] sm:$0xff]  ;;  %v2646_v34 = vld [vmem:[%s3459_s5 + $0x78] sm:$0xff] }
 0x11a   :  { %v1013_v57 = vsel %vm223_vm4, %v1004_v28, %v1012_v33  ;;  %v1129_v7 = vrot.slane %v1127_v37, 3  ;;  %v923_v27 = vsel %vm639_vm10, %v922_v14, %v918_v39  ;;  %v1088_v20 = vor.u32 %v1087_v38, %v1084_v19  ;;  %v826_v39 = vld [vmem:[%s3458_s4] sm:$0x7]  ;;  %v2640_v61 = vld [vmem:[%s3459_s5 + $0x48] sm:$0xff]  ;;  %1970 = vmatpush.bf16.msrb.mxu1 %v2646_v34 }
 0x11b   :  { %v1096_v31 = vor.u32 %v1095_v17, %v1092_v16  ;;  %v1099_v21 = vshrl.u32 %v922_v14, 16  ;;  %v1102_v32 = vshll.u32 %v922_v14, 16  ;;  %v1107_v26 = vshrl.u32 %v923_v27, 16  ;;  %1887 = vmatpush.bf16.msrb.mxu0 %v2641_v9  ;;  %v2632_v37 = vld [vmem:[%s3459_s5 + $0x8] sm:$0xff] }
 0x11c   :  { %v1110_v35 = vshll.u32 %v923_v27, 16  ;;  %v1122_v12 = vor.u32 %v1121_v10, %v1118_v25  ;;  %v1130_v36 = vor.u32 %v1129_v7, %v1126_v30  ;;  %v1146_v52 = vperm.slane %v826_v39, 0  ;;  %1778 = vmatpush.bf16.msra.mxu2 %v2636_v11  ;;  %v2639_v30 = vld [vmem:[%s3459_s5 + $0x40] sm:$0xff]  ;;  %v2645_v7 = vld [vmem:[%s3459_s5 + $0x70] sm:$0xff] }
 0x11d   :  { %v1097_v2 = vsel %vm223_vm4, %v1088_v20, %v1096_v31  ;;  %v1101_v41 = vrot.slane %v1099_v21, 2  ;;  %v1104_v42 = vrot.slane %v1102_v32, 3  ;;  %v1109_v53 = vrot.slane %v1107_v26, 2  ;;  %1832 = vmatpush.bf16.msrb.mxu3 %v2633_v50  ;;  %v2635_v27 = vld [vmem:[%s3459_s5 + $0x20] sm:$0xff] }
 0x11e   :  { %v1112_v55 = vrot.slane %v1110_v35, 3  ;;  %v1131_v56 = vsel %vm223_vm4, %v1122_v12, %v1130_v36  ;;  %v3305_v10 = vperm.slane %v826_v39, 1  ;;  %v2631_v32 = vld [vmem:[%s3459_s5] sm:$0xff]  ;;  %v3319_v26 = vperm.slane %v826_v39, 2  ;;  %1971 = vmatpush.bf16.msrb.mxu1 %v2645_v7  ;;  %v2644_v36 = vld [vmem:[%s3459_s5 + $0x68] sm:$0xff] }
 0x11f   :  { %v1105_v43 = vor.u32 %v1104_v42, %v1101_v41  ;;  %1888 = vmatpush.bf16.msrb.mxu0 %v2640_v61  ;;  %v2667_v49 = vmov 0   ;;  %vm1989_vm9 = vcmask 1046532  }
 0x120   :  { %1586 = vmatmul.bf16.vlgmr.msra.gmra.mxu0 %v1013_v57  ;;  %v1113_v18 = vor.u32 %v1112_v55, %v1109_v53  ;;  %1779 = vmatpush.bf16.msra.mxu2 %v2635_v27  ;;  %v2649_v55 = vld [vmem:[%s3459_s5 + $0x90] sm:$0xff]  ;;  %v3352_v63 = vrot.slane %v2667_v49, 7  ;;  %vm1990_vm10 = vmor %vm487_vm7, %vm1989_vm9  ;;  %vm2109_vm7 = vcmask 1041409  }
 0x121   :  { %1833 = vmatpush.bf16.msrb.mxu3 %v2632_v37 }
 0x122   :  { %v1114_v45 = vsel %vm223_vm4, %v1105_v43, %v1113_v18  ;;  %1972 = vmatpush.bf16.msrb.mxu1 %v2644_v36  ;;  %vm1694_vm4 = vsmask.f32 4368  ;;  %v1700_v37 = vrot.slane %v3352_v63, 4 }
 0x123   :  { %1889 = vmatpush.bf16.msrb.mxu0 %v2639_v30  ;;  %vm3373_vm6 = vmor %vm1693_vm3, %vm1694_vm4 }
 0x125   :  { %1834 = vmatpush.bf16.msrb.mxu3 %v2631_v32 }
 0x126   :  { %1572 = vmatmul.bf16.gmra.mxu3 %v1097_v2  ;;  %v2650_v2 = vld [vmem:[%s3459_s5 + $0x98] sm:$0xff] }
 0x127   :  { %2044 = vmatpush.bf16.msrb.mxu2 %v2650_v2 }
 0x129   :  { %1610 = vmatmul.bf16.gmra.mxu1 %v1131_v56 }
 0x12b   :  { %2045 = vmatpush.bf16.msrb.mxu2 %v2649_v55 }
 0x130   :  { %1591 = vmatmul.bf16.gmra.mxu0 %v1114_v45 }
 0x176   :  { %v1530_v40 = vpop.f32.mrf.mxu1 }
 0x179   :  { %v1492_v47 = vpop.f32.mrf.mxu3 }
 0x17a   :  { %v1493_v29 = vadd.f32 %v1492_v47, %v1146_v52  ;;  %v3337_v47 = vrot.slane %v2666_v4, 7 }
 0x17d   :  { %v1511_v48 = vpop.f32.mrf.mxu0 }
 0x17e   :  { %v1532_v51 = vpop.f32.mrf.mxu1  ;;  %v1512_v13 = vadd.f32 %v1511_v48, %v1493_v29 }
 0x180   :  { %v1531_v15 = vadd.f32 %v1530_v40, %v1512_v13  ;;  %v2643_v40 = vld [vmem:[%s3459_s5 + $0x60] sm:$0xff] }
 0x181   :  { %v1494_v58 = vpop.f32.mrf.mxu3  ;;  %1973 = vmatpush.bf16.msrb.mxu1 %v2643_v40 }
 0x182   :  { %v1549_v23 = vpop.f32.mrf.mxu2  ;;  %v1495_v3 = vadd.f32 %v1494_v58, %v1146_v52 }
 0x183   :  { %v1550_v8 = vadd.f32 %v1549_v23, %v1531_v15 }
 0x185   :  { %v1513_v54 = vpop.f32.mrf.mxu0 }
 0x186   :  { %v3271_v46 = vpop.f32.mrf.mxu1  ;;  %v1514_v59 = vadd.f32 %v1513_v54, %v1495_v3  ;;  %v2648_v3 = vld [vmem:[%s3459_s5 + $0x88] sm:$0xff] }
 0x187   :  { %2046 = vmatpush.bf16.msrb.mxu2 %v2648_v3 }
 0x188   :  { %v1533_v14 = vadd.f32 %v1532_v51, %v1514_v59 }
 0x189   :  { %v1497_v22 = vpop.f32.mrf.mxu3 }
 0x18a   :  { %v1551_v6 = vpop.f32.mrf.mxu2  ;;  %v1498_v19 = vadd.f32 %v1497_v22, %v1146_v52 }
 0x18b   :  { %v1552_v17 = vadd.f32 %v1551_v6, %v1533_v14 }
 0x18d   :  { %v1516_v62 = vpop.f32.mrf.mxu0 }
 0x18e   :  { %v3276_v0 = vpop.f32.mrf.mxu1  ;;  %v1517_v57 = vadd.f32 %v1516_v62, %v1498_v19  ;;  %v1682_v62 = vrot.slane %v3337_v47, 4 }
 0x190   :  { %v1536_v42 = vadd.f32 %v3271_v46, %v1517_v57 }
 0x191   :  { %v1499_v24 = vpop.f32.mrf.mxu3 }
 0x192   :  { %v1554_v20 = vpop.f32.mrf.mxu2  ;;  %v1500_v31 = vadd.f32 %v1499_v24, %v1146_v52 }
 0x193   :  { %v1555_v48 = vadd.f32 %v1554_v20, %v1536_v42 }
 0x195   :  { %v1518_v5 = vpop.f32.mrf.mxu0 }
 0x196   :  { %v1606_v28 = vpop.f32.mrf.mxu1  ;;  %v1519_v56 = vadd.f32 %v1518_v5, %v1500_v31 }
 0x198   :  { %v1538_v39 = vadd.f32 %v3276_v0, %v1519_v56 }
 0x199   :  { %v1568_v33 = vpop.f32.mrf.mxu3 }
 0x19a   :  { %v1569_v44 = vadd.f32 %v1568_v33, %v1550_v8  ;;  %v1556_v60 = vpop.f32.mrf.mxu2  ;;  %v2647_v33 = vld [vmem:[%s3459_s5 + $0x80] sm:$0xff] }
 0x19b   :  { %v1557_v5 = vadd.f32 %v1556_v60, %v1538_v39  ;;  %2047 = vmatpush.bf16.msrb.mxu2 %v2647_v33 }
 0x19d   :  { %v1587_v38 = vpop.f32.mrf.mxu0 }
 0x19e   :  { %v1588_v16 = vadd.f32 %v1587_v38, %v1569_v44  ;;  %v1608_v41 = vpop.f32.mrf.mxu1 }
 0x1a0   :  { %v1607_v25 = vadd.f32 %v1606_v28, %v1588_v16 }
 0x1a1   :  { %v1570_v21 = vpop.f32.mrf.mxu3 }
 0x1a2   :  { %v1616_v35 = vmax.f32 %v1607_v25, 0.0  ;;  %v1571_v12 = vadd.f32 %v1570_v21, %v1552_v17 }
 0x1a4   :  { %v1621_v53 = vmul.f32 %v3305_v10, %v1616_v35 }
 0x1a5   :  { %v1589_v43 = vpop.f32.mrf.mxu0 }
 0x1a6   :  { %v1626_v18 = vadd.f32 %v3319_v26, %v1621_v53  ;;  %v1590_v45 = vadd.f32 %v1589_v43, %v1571_v12  ;;  %v1611_v0 = vpop.f32.mrf.mxu1 }
 0x1a8   :  { %v3339_v51 = vpack.c.bf16 %v1626_v18, %v1626_v18  ;;  %v1609_v58 = vadd.f32 %v1608_v41, %v1590_v45 }
 0x1a9   :  { %v1573_v54 = vpop.f32.mrf.mxu3 }
 0x1aa   :  { %v1702_v46 = vshrl.u32 %v3339_v51, 16  ;;  %v1617_v52 = vmax.f32 %v1609_v58, 0.0  ;;  %v1574_v22 = vadd.f32 %v1573_v54, %v1555_v48  ;;  %v1705_v29 = vshll.u32 %v3339_v51, 16 }
 0x1ab   :  { %v1683_v13 = vrot.slane %v3339_v51, 7  ;;  %v1846_v44 = vunpack.c.l.b16 %v3339_v51  ;;  %v1918_v48 = vrot.slane %v2667_v49, 5 }
 0x1ac   :  { %v1622_v23 = vmul.f32 %v3305_v10, %v1617_v52  ;;  %v1704_v15 = vrot.slane %v1702_v46, 7  ;;  %v1907_v59 = vrot.slane %v1702_v46, 4  ;;  %v1908_v9 = vrot.slane %v1705_v29, 5 }
 0x1ad   :  { %v1592_v1 = vpop.f32.mrf.mxu0  ;;  %v1684_v28 = vsel %vm3348_vm0, %v1682_v62, %v1683_v13  ;;  %v1685_v61 = vrot.slane %v1683_v13, 4 }
 0x1ae   :  { %v1627_v6 = vadd.f32 %v3319_v26, %v1622_v23  ;;  %v1593_v8 = vadd.f32 %v1592_v1, %v1574_v22  ;;  %v1707_v14 = vor.u32 %v1705_v29, %v1704_v15  ;;  %v1791_v7 = vunpack.c.l.b16 %v1684_v28  ;;  %v1613_v18 = vpop.f32.mrf.mxu1 }
 0x1af   :  { %v1909_v27 = vor.u32 %v1908_v9, %v1907_v59  ;;  %v1709_v41 = vrot.slane %v1704_v15, 4 }
 0x1b0   :  { %v3358_v11 = vpack.c.bf16 %v1627_v6, %v1627_v6  ;;  %v1612_v50 = vadd.f32 %v1611_v0, %v1593_v8  ;;  %v1708_v2 = vsel %vm3373_vm6, %v1700_v37, %v1707_v14 }
 0x1b1   :  { %v1575_v34 = vpop.f32.mrf.mxu3  ;;  %v1910_v45 = vrot.slane %v1909_v27, 4  ;;  %v1735_v52 = vunpack.c.l.b16 %v1708_v2 }
 0x1b2   :  { %v1711_v19 = vshrl.u32 %v3358_v11, 16  ;;  %v1714_v38 = vshll.u32 %v3358_v11, 16  ;;  %v1618_v16 = vmax.f32 %v1612_v50, 0.0  ;;  %v1576_v17 = vadd.f32 %v1575_v34, %v1557_v5 }
 0x1b3   :  { %v1847_v25 = vunpack.c.l.b16 %v3358_v11  ;;  %v1686_v30 = vrot.slane %v3358_v11, 7 }
 0x1b4   :  { %v1623_v20 = vmul.f32 %v3305_v10, %v1618_v16  ;;  %v1713_v31 = vrot.slane %v1711_v19, 7  ;;  %v1911_v21 = vrot.slane %v1714_v38, 5  ;;  %v1913_v32 = vrot.slane %v1711_v19, 4 }
 0x1b5   :  { %v1594_v35 = vpop.f32.mrf.mxu0  ;;  %v1850_v12 = vpack.c.b16 %v1847_v25, %v1846_v44  ;;  %v1687_v36 = vsel %vm3348_vm0, %v1685_v61, %v1686_v30 }
 0x1b6   :  { %v1628_v53 = vadd.f32 %v3319_v26, %v1623_v20  ;;  %v1595_v55 = vadd.f32 %v1594_v35, %v1576_v17  ;;  %v1792_v56 = vunpack.c.l.b16 %v1687_v36  ;;  %v1716_v43 = vor.u32 %v1714_v38, %v1713_v31 }
 0x1b7   :  { %2513 = vmatmul.msk.bf16.vlgmr.msrb.gmra.mxu0 %vm1765_vm5, %v1850_v12  ;;  %v1914_v40 = vor.u32 %v1913_v32, %v1911_v21  ;;  %v1912_v60 = vsel %vm3388_vm8, %v1910_v45, %v1911_v21  ;;  %v1996_v45 = vrot.slane %v2666_v4, 5 }
 0x1b8   :  { %v3394_v58 = vpack.c.bf16 %v1628_v53, %v1628_v53  ;;  %v1614_v39 = vadd.f32 %v1613_v18, %v1595_v55  ;;  %v1795_v54 = vpack.c.b16 %v1792_v56, %v1791_v7  ;;  %v1717_v46 = vsel %vm3373_vm6, %v1709_v41, %v1716_v43 }
 0x1b9   :  { %v1736_v22 = vunpack.c.l.b16 %v1717_v46  ;;  %v1915_v29 = vrot.slane %v1914_v40, 4  ;;  %v1930_v3 = vunpack.c.l.b16 %v1912_v60  ;;  %v1993_v43 = vrot.slane %v3358_v11, 5 }
 0x1ba   :  { %v1619_v23 = vmax.f32 %v1614_v39, 0.0  ;;  %2495 = vmatmul.msk.bf16.vlgmr.msrb.gmra.mxu3 %vm1765_vm5, %v1795_v54  ;;  %v1719_v13 = vshrl.u32 %v3394_v58, 16  ;;  %v1722_v49 = vshll.u32 %v3394_v58, 16  ;;  %v1688_v6 = vrot.slane %v3394_v58, 7 }
 0x1bb   :  { %v1739_v0 = vpack.c.b16 %v1736_v22, %v1735_v52  ;;  %v1919_v1 = vsel %vm3388_vm8, %v1915_v29, %v1918_v48  ;;  %v1848_v34 = vunpack.c.l.b16 %v3394_v58  ;;  %v1995_v18 = vrot.slane %v1993_v43, 4 }
 0x1bc   :  { %v1624_v15 = vmul.f32 %v3305_v10, %v1619_v23  ;;  %v1931_v5 = vunpack.c.l.b16 %v1919_v1  ;;  %v1721_v8 = vrot.slane %v1719_v13, 7  ;;  %v1920_v50 = vrot.slane %v1719_v13, 4 }
 0x1bd   :  { %2477 = vmatmul.msk.bf16.vlgmr.msra.gmra.mxu2 %vm1765_vm5, %v1739_v0  ;;  %v1921_v28 = vrot.slane %v1722_v49, 5  ;;  %v1689_v10 = vsel %vm3348_vm0, %v1682_v62, %v1688_v6  ;;  %v1690_v44 = vrot.slane %v1688_v6, 4  ;;  %v2533_v40 = vrot.slane %v3339_v51, 9 }
 0x1be   :  { %v1629_v59 = vadd.f32 %v3319_v26, %v1624_v15  ;;  %v1934_v9 = vpack.c.b16 %v1931_v5, %v1930_v3  ;;  %v1724_v61 = vor.u32 %v1722_v49, %v1721_v8  ;;  %v1793_v27 = vunpack.c.l.b16 %v1689_v10 }
 0x1bf   :  { %v1922_v26 = vor.u32 %v1921_v28, %v1920_v50  ;;  %v1726_v62 = vrot.slane %v1721_v8, 4  ;;  %v1997_v39 = vsel %vm1990_vm10, %v1995_v18, %v1996_v45  ;;  %v1994_v42 = vsel %vm1990_vm10, %v2533_v40, %v1993_v43 }
 0x1c0   :  { %v1674_v33 = vpack.c.bf16 %v1629_v59, %v1629_v59  ;;  %2531 = vmatmul.msk.bf16.vlgmr.msrb.gmra.mxu1 %vm1765_vm5, %v1934_v9  ;;  %v1725_v47 = vsel %vm3373_vm6, %v1700_v37, %v1724_v61  ;;  %v2004_v54 = vunpack.c.l.b16 %v1994_v42  ;;  %v2534_v22 = vrot.slane %v3394_v58, 9  ;;  %v1670_v58 = vld [vmem:[%s3461_s6] sm:$0x7] }
 0x1c1   :  { %v1923_v35 = vrot.slane %v1922_v26, 4  ;;  %v1737_v36 = vunpack.c.l.b16 %v1725_v47  ;;  %v2063_v61 = vperm.slane %v1670_v58, 0  ;;  %v14_v42 = vstv %s3462_s8 }
 0x1c2   :  { %v1849_v14 = vunpack.c.l.b16 %v1674_v33  ;;  %v1691_v19 = vrot.slane %v1674_v33, 7  ;;  %v1728_v38 = vshrl.u32 %v1674_v33, 16  ;;  %v1731_v16 = vshll.u32 %v1674_v33, 16  ;;  %15 = vst [vmem:[#allocation2] sm:$0x1] %v14_v42 }
 0x1c3   :  { %v2000_v52 = vrot.slane %v1674_v33, 5 }
 0x1c4   :  { %v1851_v17 = vpack.c.b16 %v1849_v14, %v1848_v34  ;;  %v1692_v25 = vsel %vm3348_vm0, %v1690_v44, %v1691_v19  ;;  %v1730_v30 = vrot.slane %v1728_v38, 7  ;;  %v1924_v7 = vrot.slane %v1731_v16, 5 }
 0x1c5   :  { %v1794_v20 = vunpack.c.l.b16 %v1692_v25  ;;  %v1926_v31 = vrot.slane %v1728_v38, 4  ;;  %v2002_v11 = vrot.slane %v2000_v52, 4  ;;  %v2001_v29 = vsel %vm1990_vm10, %v2534_v22, %v2000_v52 }
 0x1c6   :  { %v1733_v21 = vor.u32 %v1731_v16, %v1730_v30  ;;  %v1925_v41 = vsel %vm3388_vm8, %v1923_v35, %v1924_v7  ;;  %v2006_v13 = vunpack.c.l.b16 %v2001_v29 }
 0x1c7   :  { %2514 = vmatmul.msk.bf16.gmra.mxu0 %vm1765_vm5, %v1851_v17  ;;  %v1796_v32 = vpack.c.b16 %v1794_v20, %v1793_v27  ;;  %v1927_v12 = vor.u32 %v1926_v31, %v1924_v7  ;;  %v1932_v55 = vunpack.c.l.b16 %v1925_v41  ;;  %v2003_v60 = vsel %vm1990_vm10, %v2002_v11, %v1996_v45 }
 0x1c8   :  { %v1734_v24 = vsel %vm3373_vm6, %v1726_v62, %v1733_v21  ;;  %v2007_v23 = vunpack.c.l.b16 %v2003_v60  ;;  %v2072_v27 = vperm.slane %v1670_v58, 1  ;;  %v2077_v21 = vperm.slane %v1670_v58, 2 }
 0x1c9   :  { %v1738_v2 = vunpack.c.l.b16 %v1734_v24  ;;  %v1928_v53 = vrot.slane %v1927_v12, 4 }
 0x1ca   :  { %2496 = vmatmul.msk.bf16.gmra.mxu3 %vm1765_vm5, %v1796_v32  ;;  %v2009_v4 = vpack.c.b16 %v2007_v23, %v2006_v13 }
 0x1cb   :  { %v1740_v63 = vpack.c.b16 %v1738_v2, %v1737_v36  ;;  %v1929_v37 = vsel %vm3388_vm8, %v1928_v53, %v1918_v48  ;;  %v2005_v48 = vunpack.c.l.b16 %v1997_v39 }
 0x1cc   :  { %v1933_v56 = vunpack.c.l.b16 %v1929_v37 }
 0x1cd   :  { %2478 = vmatmul.msk.bf16.gmra.mxu2 %vm1765_vm5, %v1740_v63  ;;  %v2008_v46 = vpack.c.b16 %v2005_v48, %v2004_v54 }
 0x1ce   :  { %v1935_v57 = vpack.c.b16 %v1933_v56, %v1932_v55 }
 0x1d0   :  { %2532 = vmatmul.msk.bf16.gmra.mxu1 %vm1765_vm5, %v1935_v57 }
 0x1dd   :  { %2551 = vmatmul.msk.bf16.vlgmr.msrb.gmra.mxu2 %vm1765_vm5, %v2008_v46 }
 0x1ed   :  { %2552 = vmatmul.msk.bf16.gmra.mxu2 %vm1765_vm5, %v2009_v4 }
 0x234   :  { %v1891_v15 = vpop.f32.mrf.mxu0 }
 0x23c   :  { %v1893_v9 = vpop.f32.mrf.mxu0 }
 0x23d   :  { %v1836_v1 = vpop.f32.mrf.mxu3  ;;  %v1975_v3 = vpop.f32.mrf.mxu1 }
 0x240   :  { %v1781_v0 = vpop.f32.mrf.mxu2 }
 0x241   :  { %v1837_v6 = vadd.f32 %v1836_v1, %v1781_v0 }
 0x243   :  { %v1901_v59 = vadd.f32 %v1891_v15, %v1837_v6 }
 0x244   :  { %v1896_v26 = vpop.f32.mrf.mxu0 }
 0x245   :  { %v1838_v8 = vpop.f32.mrf.mxu3  ;;  %v1985_v33 = vadd.f32 %v1975_v3, %v1901_v59  ;;  %v1977_v34 = vpop.f32.mrf.mxu1 }
 0x248   :  { %v1783_v51 = vpop.f32.mrf.mxu2 }
 0x249   :  { %v1839_v50 = vadd.f32 %v1838_v8, %v1783_v51 }
 0x24b   :  { %v1902_v10 = vadd.f32 %v1893_v9, %v1839_v50  ;;  %v2664_v50 = vld [vmem:[%s3460_s7] ss:$0 sm:$0xff] }
 0x24c   :  { %v1898_v53 = vpop.f32.mrf.mxu0 }
 0x24d   :  { %v1841_v14 = vpop.f32.mrf.mxu3  ;;  %v1986_v16 = vadd.f32 %v1977_v34, %v1902_v10  ;;  %v1980_v31 = vpop.f32.mrf.mxu1 }
 0x250   :  { %v1786_v49 = vpop.f32.mrf.mxu2 }
 0x251   :  { %v1842_v19 = vadd.f32 %v1841_v14, %v1786_v49 }
 0x253   :  { %v1903_v30 = vadd.f32 %v1896_v26, %v1842_v19 }
 0x255   :  { %v1843_v62 = vpop.f32.mrf.mxu3  ;;  %v1987_v24 = vadd.f32 %v1980_v31, %v1903_v30  ;;  %v1982_v43 = vpop.f32.mrf.mxu1 }
 0x258   :  { %v1788_v5 = vpop.f32.mrf.mxu2 }
 0x259   :  { %v1844_v32 = vadd.f32 %v1843_v62, %v1788_v5 }
 0x25b   :  { %v1904_v63 = vadd.f32 %v1898_v53, %v1844_v32 }
 0x25d   :  { %v1988_v45 = vadd.f32 %v1982_v43, %v1904_v63 }
 0x260   :  { %v2049_v28 = vpop.f32.mrf.mxu2 }
 0x261   :  { %v2059_v44 = vadd.f32 %v2049_v28, %v1985_v33 }
 0x263   :  { %v2064_v38 = vadd.f32 %v2063_v61, %v2059_v44  ;;  %v2665_v44 = vld [vmem:[#allocation2] ss:$0 sm:$0xff] }
 0x265   :  { %v2068_v7 = vmax.f32 %v2064_v38, 0.0 }
 0x267   :  { %v2073_v35 = vmul.f32 %v2072_v27, %v2068_v7 }
 0x268   :  { %v2051_v17 = vpop.f32.mrf.mxu2 }
 0x269   :  { %v2060_v25 = vadd.f32 %v2051_v17, %v1986_v16  ;;  %v2078_v37 = vadd.f32 %v2077_v21, %v2073_v35 }
 0x26b   :  { %v2065_v20 = vadd.f32 %v2063_v61, %v2060_v25  ;;  %v2082_v57 = vsel %vm160_vm2, %v2078_v37, -inf }
 0x26d   :  { %v2069_v47 = vmax.f32 %v2065_v20, 0.0 }
 0x26f   :  { %v2074_v12 = vmul.f32 %v2072_v27, %v2069_v47 }
 0x270   :  { %v2054_v36 = vpop.f32.mrf.mxu2 }
 0x271   :  { %v2079_v2 = vadd.f32 %v2077_v21, %v2074_v12  ;;  %v2061_v41 = vadd.f32 %v2054_v36, %v1987_v24 }
 0x273   :  { %v2066_v55 = vadd.f32 %v2063_v61, %v2061_v41  ;;  %v2083_v56 = vsel %vm160_vm2, %v2079_v2, -inf }
 0x274   :  { %v2084_v40 = vmax.f32 %v2082_v57, %v2083_v56 }
 0x275   :  { %v2070_v18 = vmax.f32 %v2066_v55, 0.0 }
 0x276   :  { %v2085_v52 = vrot.slane %v2084_v40, 4 }
 0x277   :  { %v2075_v54 = vmul.f32 %v2072_v27, %v2070_v18 }
 0x278   :  { %v2056_v39 = vpop.f32.mrf.mxu2  ;;  %v2086_v29 = vmax.f32 %v2084_v40, %v2085_v52 }
 0x279   :  { %v2062_v48 = vadd.f32 %v2056_v39, %v1988_v45  ;;  %v2080_v22 = vadd.f32 %v2077_v21, %v2075_v54 }
 0x27a   :  { %v2087_v51 = vrot.slane %v2086_v29, 2 }
 0x27b   :  { %v2067_v46 = vadd.f32 %v2063_v61, %v2062_v48  ;;  %v2091_v13 = vsel %vm160_vm2, %v2080_v22, -inf }
 0x27c   :  { %v2088_v49 = vmax.f32 %v2086_v29, %v2087_v51 }
 0x27d   :  { %v2071_v11 = vmax.f32 %v2067_v46, 0.0 }
 0x27e   :  { %v2089_v5 = vrot.slane %v2088_v49, 1 }
 0x27f   :  { %v2076_v60 = vmul.f32 %v2072_v27, %v2071_v11 }
 0x280   :  { %v2090_v59 = vmax.f32 %v2088_v49, %v2089_v5 }
 0x281   :  { %v2081_v23 = vadd.f32 %v2077_v21, %v2076_v60 }
 0x282   :  { %v2104_v28 = vmul.f32 %v2664_v50, %v2090_v59 }
 0x283   :  { %v2092_v4 = vsel %vm160_vm2, %v2081_v23, -inf  ;;  %vm2112_vm2 = vcmask 254976  }
 0x284   :  { %v2093_v0 = vmax.f32 %v2091_v13, %v2092_v4 }
 0x286   :  { %v2094_v1 = vrot.slane %v2093_v0, 4 }
 0x288   :  { %v2095_v15 = vmax.f32 %v2093_v0, %v2094_v1 }
 0x28a   :  { %v2096_v3 = vrot.slane %v2095_v15, 2 }
 0x28c   :  { %v2097_v6 = vmax.f32 %v2095_v15, %v2096_v3 }
 0x28e   :  { %v2098_v8 = vrot.slane %v2097_v6, 1 }
 0x290   :  { %v2099_v9 = vmax.f32 %v2097_v6, %v2098_v8 }
 0x292   :  { %v2105_v58 = vmul.f32 %v2664_v50, %v2099_v9 }
 0x294   :  { %v2108_v33 = vrot.slane %v2105_v58, 7 }
 0x296   :  { %v2110_v34 = vsel %vm2109_vm7, %v2108_v33, %v2104_v28 }
 0x297   :  { %v2113_v10 = vsel %vm2112_vm2, %v2110_v34, 0.0 }
 0x298   :  { %2114 = vadd.xlane.f32.xlu0 %v2113_v10 }
 0x30b   :  { %v2115_v61 = vpop.xlane.xlu0 %2114 }
 0x30c   :  { %v2120_v14 = vadd.f32 %v2665_v44, %v2115_v61 }
 0x30e   :  { %2122 = vst.msk [vmem:[%s3463_s9] sm:$0x3] %vm2121_vm11, %v2120_v14 }

</bundles_post_ra>
